<compile_context>
chip_gen: v7x
topology: tpu7x:2x2x1
jax: 0.10.0
libtpu: 0.0.40
codegen_flags: <defaults>
</compile_context>

<pallas_src>
import jax
import jax.numpy as jnp
from jax.experimental import pallas as pl
from jax.experimental.pallas import tpu as pltpu

_BN_EPS = 1e-5
_VMEM_LIMIT = 48 * 1024 * 1024   # explicit scoped-VMEM budget; safe on v5e/v6e/v7x


def _row_tile(n_rows, target, unit=1):
    """Largest tile T (rows) with T | n_rows, T*unit <= target and T*unit % 8 == 0.

    Falls back to the full extent (always a legal block shape)."""
    cap = max(1, min(n_rows, target // max(unit, 1)))
    for t in range(cap, 0, -1):
        if n_rows % t == 0 and (t * unit) % 8 == 0:
            return t
    return n_rows


# ----------------------------- Pallas kernels ------------------------------

def _upsample_kernel(x_ref, w_ref, b_ref, o_ref):
    # x_ref: (T*W, Cin)        flattened (b, h, w) input rows
    # w_ref: (2, Cin, 2*Cout)  per-kh tap, columns ordered (kw, co)
    # b_ref: (1, 2*Cout)
    # o_ref: (T, 2, W, 2*Cout) == contiguous regrouping of NHWC (B, 2H, 2W, Cout)
    T, _, W, C2 = o_ref.shape
    x = x_ref[...]
    bias = b_ref[...].astype(jnp.float32)
    y0 = jnp.dot(x, w_ref[0], preferred_element_type=jnp.float32) + bias
    y1 = jnp.dot(x, w_ref[1], preferred_element_type=jnp.float32) + bias
    # Row regroup (keeps the lane dim) — no lane-folding relayout.
    o_ref[:, 0, :, :] = y0.reshape(T, W, C2).astype(o_ref.dtype)
    o_ref[:, 1, :, :] = y1.reshape(T, W, C2).astype(o_ref.dtype)


def _conv3x3_rows_kernel(x0_ref, x1_ref, x2_ref, w_ref, y_ref, part_ref):
    # xk_ref : (Wc, 3*Cc)      row h+k of the W-unrolled, zero-padded input
    # w_ref  : (3, 3*Cc, Cout) 3x3 weights folded as (dh, (dw, ci), co)
    # y_ref  : (Wc, Cout) f32  pre-BN conv output for output row (b, h)
    # part_ref: (2, Cout) f32  per-row [sum, sum_of_squares] for BN statistics
    acc = jnp.dot(x0_ref[...], w_ref[0], preferred_element_type=jnp.float32)
    acc = acc + jnp.dot(x1_ref[...], w_ref[1], preferred_element_type=jnp.float32)
    acc = acc + jnp.dot(x2_ref[...], w_ref[2], preferred_element_type=jnp.float32)
    y_ref[...] = acc
    part_ref[0:1, :] = jnp.sum(acc, axis=0, keepdims=True)
    part_ref[1:2, :] = jnp.sum(acc * acc, axis=0, keepdims=True)


def _bn_relu_kernel(y_ref, s_ref, t_ref, o_ref):
    # y_ref: (T, Wc*Cout) f32   lane-dense slab; s/t: (1, Wc*Cout) scale/shift
    o_ref[...] = jnp.maximum(y_ref[...] * s_ref[...] + t_ref[...], 0.0
                             ).astype(o_ref.dtype)


# ------------------------------ JAX wrappers --------------------------------

def _up_conv_transpose2x2(x_nhwc, w_t, b_t, compute_dtype):
    # w_t: PyTorch ConvTranspose2d weight (Cin, Cout, 2, 2); b_t: (Cout,)
    B, H, W, Cin = x_nhwc.shape
    Cout = w_t.shape[1]
    # (Cin, Cout, kh, kw) -> (kh, Cin, kw, Cout) -> (2, Cin, 2*Cout)
    w_k = jnp.transpose(w_t, (2, 0, 3, 1)).reshape(2, Cin, 2 * Cout).astype(compute_dtype)
    b_k = jnp.tile(b_t, 2).reshape(1, 2 * Cout).astype(jnp.float32)
    x2d = x_nhwc.reshape(B * H * W, Cin).astype(compute_dtype)   # free reshape

    T = _row_tile(B * H, 512, unit=W)        # ~512 flattened rows per tile
    grid = (B * H // T,)
    out = pl.pallas_call(
        _upsample_kernel,
        out_shape=jax.ShapeDtypeStruct((B * H, 2, W, 2 * Cout), jnp.float32),
        grid=grid,
        in_specs=[
            pl.BlockSpec((T * W, Cin), lambda i: (i, 0)),
            pl.BlockSpec((2, Cin, 2 * Cout), lambda i: (0, 0, 0)),
            pl.BlockSpec((1, 2 * Cout), lambda i: (0, 0)),
        ],
        out_specs=pl.BlockSpec((T, 2, W, 2 * Cout), lambda i: (i, 0, 0, 0)),
        compiler_params=pltpu.CompilerParams(
            dimension_semantics=("parallel",),
            vmem_limit_bytes=_VMEM_LIMIT),
    )(x2d, w_k, b_k)
    # (B*H, 2, W, 2*Cout) is a contiguous regrouping of (B, 2H, 2W, Cout): free.
    return out.reshape(B, 2 * H, 2 * W, Cout)


def _build_x3(x_nhwc, compute_dtype):
    """W-direction tap unroll + zero pad: (B,H,W,C) -> (B, H+2, W, 3*C).

    Channel order (dw, ci) matches the folded weight layout.  XLA fuses the
    pad / slices / concat (and any preceding elementwise BN+ReLU) into this
    single slab producer."""
    B, H, W, C = x_nhwc.shape
    xp = jnp.pad(x_nhwc, ((0, 0), (1, 1), (1, 1), (0, 0)))
    x3 = jnp.concatenate([xp[:, :, d:d + W, :] for d in range(3)], axis=-1)
    return x3.astype(compute_dtype)


def _conv3x3_rows(x3, w, compute_dtype):
    # x3: (B, Hc+2, Wc, 3*Cc) W-unrolled padded input; w: PyTorch (Cout, Cc, 3, 3)
    B, Hp2, Wc, C3 = x3.shape
    Hc = Hp2 - 2
    Cout, Cc = w.shape[0], w.shape[1]
    assert C3 == 3 * Cc
    # (Cout, Cc, kh, kw) -> (kh, kw, Cc, Cout) -> (3, 3*Cc, Cout)
    w_k = jnp.transpose(w, (2, 3, 1, 0)).reshape(3, 3 * Cc, Cout).astype(compute_dtype)

    def x_spec(dh):
        # 1-row H blocks => block index == element index, so h+dh gives the
        # halo row without overlapping blocks or in-kernel shifts.
        return pl.BlockSpec((None, None, Wc, 3 * Cc),
                            lambda b, h, dh=dh: (b, h + dh, 0, 0))

    y, part = pl.pallas_call(
        _conv3x3_rows_kernel,
        out_shape=(jax.ShapeDtypeStruct((B, Hc, Wc, Cout), jnp.float32),
                   jax.ShapeDtypeStruct((B, Hc, 2, Cout), jnp.float32)),
        grid=(B, Hc),
        in_specs=[x_spec(0), x_spec(1), x_spec(2),
                  pl.BlockSpec((3, 3 * Cc, Cout), lambda b, h: (0, 0, 0))],
        out_specs=(pl.BlockSpec((None, None, Wc, Cout), lambda b, h: (b, h, 0, 0)),
                   pl.BlockSpec((None, None, 2, Cout), lambda b, h: (b, h, 0, 0))),
        compiler_params=pltpu.CompilerParams(
            dimension_semantics=("parallel", "parallel"),
            vmem_limit_bytes=_VMEM_LIMIT),
    )(x3, x3, x3, w_k)
    return y, part


def _bn_scale_shift(part, gamma, beta, n):
    # part: (B, Hc, 2, Cout) per-row [sum, sum_sq] partials -> BN scale/shift.
    sums = jnp.sum(part, axis=(0, 1))                       # (2, Cout) f32
    mean = sums[0] / n
    var = jnp.maximum(sums[1] / n - mean * mean, 0.0)       # guard cancellation
    scale = gamma * jax.lax.rsqrt(var + _BN_EPS)
    shift = beta - mean * scale
    return scale, shift


def _bn_relu_apply(y, scale, shift, out_dtype):
    # Lane-dense tiled elementwise epilogue: (B,Hc,Wc,Cout) -> (B*Hc, Wc*Cout).
    B, Hc, Wc, Cout = y.shape
    L = Wc * Cout
    y2 = y.reshape(B * Hc, L)                                # free reshape
    s_row = jnp.tile(scale, Wc).reshape(1, L).astype(jnp.float32)
    t_row = jnp.tile(shift, Wc).reshape(1, L).astype(jnp.float32)
    T = _row_tile(B * Hc, 256, unit=1)
    out = pl.pallas_call(
        _bn_relu_kernel,
        out_shape=jax.ShapeDtypeStruct((B * Hc, L), out_dtype),
        grid=(B * Hc // T,),
        in_specs=[pl.BlockSpec((T, L), lambda i: (i, 0)),
                  pl.BlockSpec((1, L), lambda i: (0, 0)),
                  pl.BlockSpec((1, L), lambda i: (0, 0))],
        out_specs=pl.BlockSpec((T, L), lambda i: (i, 0)),
        compiler_params=pltpu.CompilerParams(
            dimension_semantics=("parallel",),
            vmem_limit_bytes=_VMEM_LIMIT),
    )(y2, s_row, t_row)
    return out.reshape(B, Hc, Wc, Cout)


def decoder_block_forward(x_nchw, skip_nchw, params, compute_dtype=jnp.float32):
    """Pallas implementation of DecoderBlock.forward (NCHW in / NCHW out)."""
    out_dtype = x_nchw.dtype
    x = jnp.transpose(x_nchw, (0, 2, 3, 1))        # -> NHWC
    skip = jnp.transpose(skip_nchw, (0, 2, 3, 1))  # -> NHWC

    # 1) ConvTranspose2d(k=2, s=2) upsample (Pallas, no post-kernel transpose).
    up = _up_conv_transpose2x2(x, params["up_w"], params["up_b"], compute_dtype)

    # 2) F.pad(x, [w_l, w_r, h_t, h_b]) to match skip's spatial size.
    dh = skip.shape[1] - up.shape[1]
    dw = skip.shape[2] - up.shape[2]
    up = jnp.pad(up, ((0, 0), (dh // 2, dh - dh // 2),
                      (dw // 2, dw - dw // 2), (0, 0)))

    # 3) channel concat [skip, up]; absorbed into the conv1 slab build below.
    xcat = jnp.concatenate([skip, up.astype(skip.dtype)], axis=-1)
    B, Hc, Wc, _ = xcat.shape
    n = B * Hc * Wc

    # 4) ConvBlock 1: conv3x3 (Pallas) + per-row BN partials; BN+ReLU is folded
    #    (by XLA) into the conv2 input-slab build — no extra HBM pass.
    y1, p1 = _conv3x3_rows(_build_x3(xcat, compute_dtype), params["c1_w"], compute_dtype)
    s1, t1 = _bn_scale_shift(p1, params["c1_g"], params["c1_b"], n)
    a1 = jnp.maximum(y1 * s1 + t1, 0.0)

    # 5) ConvBlock 2: conv3x3 (Pallas) + BN+ReLU epilogue (Pallas, lane-dense).
    y2, p2 = _conv3x3_rows(_build_x3(a1, compute_dtype), params["c2_w"], compute_dtype)
    s2, t2 = _bn_scale_shift(p2, params["c2_g"], params["c2_b"], n)
    out = _bn_relu_apply(y2, s2, t2, out_dtype)

    return jnp.transpose(out, (0, 3, 1, 2))        # -> NCHW


# ---------------------------- pure-JAX reference ----------------------------

def _bn_relu_ref(y, g, b):
    mean = y.mean(axis=(0, 2, 3), keepdims=True)
    var = ((y - mean) ** 2).mean(axis=(0, 2, 3), keepdims=True)
    y = (y - mean) * jax.lax.rsqrt(var + _BN_EPS)
    y = y * g[None, :, None, None] + b[None, :, None, None]
    return jnp.maximum(y, 0.0)


def _reference(x, skip, p):
    up = jnp.einsum("bihw,iokl->bohkwl", x, p["up_w"])
    B, Co, H, _, W, _ = up.shape
    up = up.reshape(B, Co, 2 * H, 2 * W) + p["up_b"][None, :, None, None]

    dh = skip.shape[2] - up.shape[2]
    dw = skip.shape[3] - up.shape[3]
    up = jnp.pad(up, ((0, 0), (0, 0), (dh // 2, dh - dh // 2),
                      (dw // 2, dw - dw // 2)))
    y = jnp.concatenate([skip, up], axis=1)

    for wk, gk, bk in (("c1_w", "c1_g", "c1_b"), ("c2_w", "c2_g", "c2_b")):
        y = jax.lax.conv_general_dilated(
            y, p[wk], window_strides=(1, 1), padding=((1, 1), (1, 1)),
            dimension_numbers=("NCHW", "OIHW", "NCHW"))
        y = _bn_relu_ref(y, p[gk], p[bk])
    return y


# ---------------------------------- main -----------------------------------

if __name__ == "__main__":
    B, C_IN, C_OUT, C_SKIP = 2, 8, 8, 8
    H, W = 8, 8                 # input spatial; skip is 2x larger (16x16)
    key = jax.random.PRNGKey(0)
    ks = jax.random.split(key, 6)

    params = {
        # ConvTranspose2d weight: (in_channels, out_channels, 2, 2), bias: (out,)
        "up_w": 0.1 * jax.random.normal(ks[0], (C_IN, C_OUT, 2, 2), jnp.float32),
        "up_b": 0.1 * jax.random.normal(ks[1], (C_OUT,), jnp.float32),
        # ConvBlock 1: Conv2d(C_OUT + C_SKIP -> C_OUT, 3x3, no bias) + BN
        "c1_w": 0.1 * jax.random.normal(ks[2], (C_OUT, C_OUT + C_SKIP, 3, 3), jnp.float32),
        "c1_g": jnp.ones((C_OUT,), jnp.float32),
        "c1_b": jnp.zeros((C_OUT,), jnp.float32),
        # ConvBlock 2: Conv2d(C_OUT -> C_OUT, 3x3, no bias) + BN
        "c2_w": 0.1 * jax.random.normal(ks[3], (C_OUT, C_OUT, 3, 3), jnp.float32),
        "c2_g": jnp.ones((C_OUT,), jnp.float32),
        "c2_b": jnp.zeros((C_OUT,), jnp.float32),
    }

    x = jax.random.normal(ks[4], (B, C_IN, H, W), jnp.float32)
    skip = jax.random.normal(ks[5], (B, C_SKIP, 2 * H, 2 * W), jnp.float32)

    fwd = jax.jit(decoder_block_forward, static_argnames=("compute_dtype",))
    ref = _reference(x, skip, params)

    # f32 path: exact-parity check.
    out = jax.block_until_ready(fwd(x, skip, params, compute_dtype=jnp.float32))
    assert out.shape == (B, C_OUT, 2 * H, 2 * W), out.shape
    assert jnp.allclose(out, ref, atol=1e-4, rtol=1e-4), float(jnp.abs(out - ref).max())

    # bf16 MXU path (v6e/v7x fast path): loose-tolerance smoke check.
    out_bf = jax.block_until_ready(fwd(x, skip, params, compute_dtype=jnp.bfloat16))
    assert jnp.allclose(out_bf, ref, atol=0.25, rtol=0.25), float(jnp.abs(out_bf - ref).max())

    print("KERNEL_OK")
</pallas_src>

<mosaic_0001>
module attributes {stable_mosaic.version = 11 : i64} {
  func.func @_upsample_kernel(%arg0: i32, %arg1: memref<128x8xf32, #tpu.memory_space<vmem>>, %arg2: memref<2x8x16xf32, #tpu.memory_space<vmem>>, %arg3: memref<1x16xf32, #tpu.memory_space<vmem>>, %arg4: memref<16x2x8x16xf32, #tpu.memory_space<vmem>>) attributes {dimension_semantics = [#tpu.dimension_semantics<parallel>], iteration_bounds = array<i64: 1>, scalar_prefetch = 0 : i64, scratch_operands = 0 : i64, tpu.core_type = #tpu.core_type<tc>, window_params = [{transform_indices = @transform_0, window_bounds = array<i64: 128, 8>}, {pipeline_mode = #tpu.pipeline_mode<synchronous>, transform_indices = @transform_1, window_bounds = array<i64: 2, 8, 16>}, {pipeline_mode = #tpu.pipeline_mode<synchronous>, transform_indices = @transform_2, window_bounds = array<i64: 1, 16>}, {transform_indices = @transform_3, window_bounds = array<i64: 16, 2, 8, 16>}]} {
    %c0 = arith.constant 0 : index
    %c0_0 = arith.constant 0 : index
    %0 = vector.load %arg1[%c0, %c0_0] : memref<128x8xf32, #tpu.memory_space<vmem>>, vector<128x8xf32>
    %c0_1 = arith.constant 0 : index
    %c0_2 = arith.constant 0 : index
    %1 = vector.load %arg3[%c0_1, %c0_2] : memref<1x16xf32, #tpu.memory_space<vmem>>, vector<1x16xf32>
    %c0_3 = arith.constant 0 : index
    %c0_4 = arith.constant 0 : index
    %c0_5 = arith.constant 0 : index
    %2 = vector.load %arg2[%c0_3, %c0_4, %c0_5] : memref<2x8x16xf32, #tpu.memory_space<vmem>>, vector<1x8x16xf32>
    %3 = vector.shape_cast %2 : vector<1x8x16xf32> to vector<8x16xf32>
    %cst = arith.constant dense<0.000000e+00> : vector<128x16xf32>
    %4 = tpu.matmul %0, %3, %cst {dimension_numbers = #tpu.dot_dimension_numbers<[1], [0], [0], [1], [0, 0, 1, 1], [], []>} : vector<128x8xf32>, vector<8x16xf32>, vector<128x16xf32> -> vector<128x16xf32>
    %5 = vector.broadcast %1 : vector<1x16xf32> to vector<128x16xf32>
    %6 = arith.addf %4, %5 : vector<128x16xf32>
    %c1 = arith.constant 1 : index
    %c0_6 = arith.constant 0 : index
    %c0_7 = arith.constant 0 : index
    %7 = vector.load %arg2[%c1, %c0_6, %c0_7] : memref<2x8x16xf32, #tpu.memory_space<vmem>>, vector<1x8x16xf32>
    %8 = vector.shape_cast %7 : vector<1x8x16xf32> to vector<8x16xf32>
    %cst_8 = arith.constant dense<0.000000e+00> : vector<128x16xf32>
    %9 = tpu.matmul %0, %8, %cst_8 {dimension_numbers = #tpu.dot_dimension_numbers<[1], [0], [0], [1], [0, 0, 1, 1], [], []>} : vector<128x8xf32>, vector<8x16xf32>, vector<128x16xf32> -> vector<128x16xf32>
    %10 = vector.broadcast %1 : vector<1x16xf32> to vector<128x16xf32>
    %11 = arith.addf %9, %10 : vector<128x16xf32>
    %12 = vector.shape_cast %6 : vector<128x16xf32> to vector<16x8x16xf32>
    %c0_9 = arith.constant 0 : index
    %c0_10 = arith.constant 0 : index
    %c0_11 = arith.constant 0 : index
    %c0_12 = arith.constant 0 : index
    %13 = vector.load %arg4[%c0_9, %c0_10, %c0_11, %c0_12] : memref<16x2x8x16xf32, #tpu.memory_space<vmem>>, vector<16x1x8x16xf32>
    %14 = vector.shape_cast %13 : vector<16x1x8x16xf32> to vector<16x8x16xf32>
    %15 = vector.shape_cast %12 : vector<16x8x16xf32> to vector<16x1x8x16xf32>
    tpu.vector_store %arg4[%c0_9, %c0_10, %c0_11, %c0_12], %15 {strides = array<i32>} : memref<16x2x8x16xf32, #tpu.memory_space<vmem>>, vector<16x1x8x16xf32>,
    %16 = vector.shape_cast %11 : vector<128x16xf32> to vector<16x8x16xf32>
    %c0_13 = arith.constant 0 : index
    %c1_14 = arith.constant 1 : index
    %c0_15 = arith.constant 0 : index
    %c0_16 = arith.constant 0 : index
    %17 = vector.load %arg4[%c0_13, %c1_14, %c0_15, %c0_16] : memref<16x2x8x16xf32, #tpu.memory_space<vmem>>, vector<16x1x8x16xf32>
    %18 = vector.shape_cast %17 : vector<16x1x8x16xf32> to vector<16x8x16xf32>
    %19 = vector.shape_cast %16 : vector<16x8x16xf32> to vector<16x1x8x16xf32>
    tpu.vector_store %arg4[%c0_13, %c1_14, %c0_15, %c0_16], %19 {strides = array<i32>} : memref<16x2x8x16xf32, #tpu.memory_space<vmem>>, vector<16x1x8x16xf32>,
    return
  }
  func.func @transform_0(%arg0: i32) -> (i32, i32) {
    %c0_i32 = arith.constant 0 : i32
    %c0_i32_0 = arith.constant 0 : i32
    return %arg0, %c0_i32 : i32, i32
  }
  func.func @transform_1(%arg0: i32) -> (i32, i32, i32) {
    %c0_i32 = arith.constant 0 : i32
    %c0_i32_0 = arith.constant 0 : i32
    %c0_i32_1 = arith.constant 0 : i32
    %c0_i32_2 = arith.constant 0 : i32
    return %c0_i32, %c0_i32_0, %c0_i32_1 : i32, i32, i32
  }
  func.func @transform_2(%arg0: i32) -> (i32, i32) {
    %c0_i32 = arith.constant 0 : i32
    %c0_i32_0 = arith.constant 0 : i32
    %c0_i32_1 = arith.constant 0 : i32
    return %c0_i32, %c0_i32_0 : i32, i32
  }
  func.func @transform_3(%arg0: i32) -> (i32, i32, i32, i32) {
    %c0_i32 = arith.constant 0 : i32
    %c0_i32_0 = arith.constant 0 : i32
    %c0_i32_1 = arith.constant 0 : i32
    %c0_i32_2 = arith.constant 0 : i32
    return %arg0, %c0_i32, %c0_i32_0, %c0_i32_1 : i32, i32, i32, i32
  }
}

module attributes {stable_mosaic.version = 11 : i64} {
  func.func @_conv3x3_rows_kernel(%arg0: i32, %arg1: i32, %arg2: memref<1x1x16x48xf32, #tpu.memory_space<vmem>>, %arg3: memref<1x1x16x48xf32, #tpu.memory_space<vmem>>, %arg4: memref<1x1x16x48xf32, #tpu.memory_space<vmem>>, %arg5: memref<3x48x8xf32, #tpu.memory_space<vmem>>, %arg6: memref<1x1x16x8xf32, #tpu.memory_space<vmem>>, %arg7: memref<1x1x2x8xf32, #tpu.memory_space<vmem>>) attributes {dimension_semantics = [#tpu.dimension_semantics<parallel>, #tpu.dimension_semantics<parallel>], iteration_bounds = array<i64: 2, 16>, scalar_prefetch = 0 : i64, scratch_operands = 0 : i64, tpu.core_type = #tpu.core_type<tc>, window_params = [{transform_indices = @transform_0, window_bounds = array<i64: 1, 1, 16, 48>}, {transform_indices = @transform_1, window_bounds = array<i64: 1, 1, 16, 48>}, {transform_indices = @transform_2, window_bounds = array<i64: 1, 1, 16, 48>}, {pipeline_mode = #tpu.pipeline_mode<synchronous>, transform_indices = @transform_3, window_bounds = array<i64: 3, 48, 8>}, {transform_indices = @transform_4, window_bounds = array<i64: 1, 1, 16, 8>}, {transform_indices = @transform_5, window_bounds = array<i64: 1, 1, 2, 8>}]} {
    %c0 = arith.constant 0 : index
    %c0_0 = arith.constant 0 : index
    %c0_1 = arith.constant 0 : index
    %c0_2 = arith.constant 0 : index
    %0 = vector.load %arg2[%c0, %c0_0, %c0_1, %c0_2] : memref<1x1x16x48xf32, #tpu.memory_space<vmem>>, vector<1x1x16x48xf32>
    %1 = vector.shape_cast %0 : vector<1x1x16x48xf32> to vector<16x48xf32>
    %c0_3 = arith.constant 0 : index
    %c0_4 = arith.constant 0 : index
    %c0_5 = arith.constant 0 : index
    %2 = vector.load %arg5[%c0_3, %c0_4, %c0_5] : memref<3x48x8xf32, #tpu.memory_space<vmem>>, vector<1x48x8xf32>
    %3 = vector.shape_cast %2 : vector<1x48x8xf32> to vector<48x8xf32>
    %cst = arith.constant dense<0.000000e+00> : vector<16x8xf32>
    %4 = tpu.matmul %1, %3, %cst {dimension_numbers = #tpu.dot_dimension_numbers<[1], [0], [0], [1], [0, 0, 1, 1], [], []>} : vector<16x48xf32>, vector<48x8xf32>, vector<16x8xf32> -> vector<16x8xf32>
    %c0_6 = arith.constant 0 : index
    %c0_7 = arith.constant 0 : index
    %c0_8 = arith.constant 0 : index
    %c0_9 = arith.constant 0 : index
    %5 = vector.load %arg3[%c0_6, %c0_7, %c0_8, %c0_9] : memref<1x1x16x48xf32, #tpu.memory_space<vmem>>, vector<1x1x16x48xf32>
    %6 = vector.shape_cast %5 : vector<1x1x16x48xf32> to vector<16x48xf32>
    %c1 = arith.constant 1 : index
    %c0_10 = arith.constant 0 : index
    %c0_11 = arith.constant 0 : index
    %7 = vector.load %arg5[%c1, %c0_10, %c0_11] : memref<3x48x8xf32, #tpu.memory_space<vmem>>, vector<1x48x8xf32>
    %8 = vector.shape_cast %7 : vector<1x48x8xf32> to vector<48x8xf32>
    %cst_12 = arith.constant dense<0.000000e+00> : vector<16x8xf32>
    %9 = tpu.matmul %6, %8, %cst_12 {dimension_numbers = #tpu.dot_dimension_numbers<[1], [0], [0], [1], [0, 0, 1, 1], [], []>} : vector<16x48xf32>, vector<48x8xf32>, vector<16x8xf32> -> vector<16x8xf32>
    %10 = arith.addf %4, %9 : vector<16x8xf32>
    %c0_13 = arith.constant 0 : index
    %c0_14 = arith.constant 0 : index
    %c0_15 = arith.constant 0 : index
    %c0_16 = arith.constant 0 : index
    %11 = vector.load %arg4[%c0_13, %c0_14, %c0_15, %c0_16] : memref<1x1x16x48xf32, #tpu.memory_space<vmem>>, vector<1x1x16x48xf32>
    %12 = vector.shape_cast %11 : vector<1x1x16x48xf32> to vector<16x48xf32>
    %c2 = arith.constant 2 : index
    %c0_17 = arith.constant 0 : index
    %c0_18 = arith.constant 0 : index
    %13 = vector.load %arg5[%c2, %c0_17, %c0_18] : memref<3x48x8xf32, #tpu.memory_space<vmem>>, vector<1x48x8xf32>
    %14 = vector.shape_cast %13 : vector<1x48x8xf32> to vector<48x8xf32>
    %cst_19 = arith.constant dense<0.000000e+00> : vector<16x8xf32>
    %15 = tpu.matmul %12, %14, %cst_19 {dimension_numbers = #tpu.dot_dimension_numbers<[1], [0], [0], [1], [0, 0, 1, 1], [], []>} : vector<16x48xf32>, vector<48x8xf32>, vector<16x8xf32> -> vector<16x8xf32>
    %16 = arith.addf %10, %15 : vector<16x8xf32>
    %c0_20 = arith.constant 0 : index
    %c0_21 = arith.constant 0 : index
    %c0_22 = arith.constant 0 : index
    %c0_23 = arith.constant 0 : index
    %17 = vector.load %arg6[%c0_20, %c0_21, %c0_22, %c0_23] : memref<1x1x16x8xf32, #tpu.memory_space<vmem>>, vector<1x1x16x8xf32>
    %18 = vector.shape_cast %17 : vector<1x1x16x8xf32> to vector<16x8xf32>
    %19 = vector.shape_cast %16 : vector<16x8xf32> to vector<1x1x16x8xf32>
    tpu.vector_store %arg6[%c0_20, %c0_21, %c0_22, %c0_23], %19 {strides = array<i32>} : memref<1x1x16x8xf32, #tpu.memory_space<vmem>>, vector<1x1x16x8xf32>,
    %cst_24 = arith.constant dense<0.000000e+00> : vector<8xf32>
    %20 = vector.multi_reduction <add>, %16, %cst_24 [0] : vector<16x8xf32> to vector<8xf32>
    %21 = vector.shape_cast %20 : vector<8xf32> to vector<1x8xf32>
    %c0_25 = arith.constant 0 : index
    %c0_26 = arith.constant 0 : index
    %c0_27 = arith.constant 0 : index
    %c0_28 = arith.constant 0 : index
    %22 = vector.load %arg7[%c0_25, %c0_26, %c0_27, %c0_28] : memref<1x1x2x8xf32, #tpu.memory_space<vmem>>, vector<1x1x1x8xf32>
    %23 = vector.shape_cast %22 : vector<1x1x1x8xf32> to vector<1x8xf32>
    %24 = vector.shape_cast %21 : vector<1x8xf32> to vector<1x1x1x8xf32>
    tpu.vector_store %arg7[%c0_25, %c0_26, %c0_27, %c0_28], %24 {strides = array<i32>} : memref<1x1x2x8xf32, #tpu.memory_space<vmem>>, vector<1x1x1x8xf32>,
    %25 = arith.mulf %16, %16 : vector<16x8xf32>
    %cst_29 = arith.constant dense<0.000000e+00> : vector<8xf32>
    %26 = vector.multi_reduction <add>, %25, %cst_29 [0] : vector<16x8xf32> to vector<8xf32>
    %27 = vector.shape_cast %26 : vector<8xf32> to vector<1x8xf32>
    %c0_30 = arith.constant 0 : index
    %c0_31 = arith.constant 0 : index
    %c1_32 = arith.constant 1 : index
    %c0_33 = arith.constant 0 : index
    %28 = vector.load %arg7[%c0_30, %c0_31, %c1_32, %c0_33] : memref<1x1x2x8xf32, #tpu.memory_space<vmem>>, vector<1x1x1x8xf32>
    %29 = vector.shape_cast %28 : vector<1x1x1x8xf32> to vector<1x8xf32>
    %30 = vector.shape_cast %27 : vector<1x8xf32> to vector<1x1x1x8xf32>
    tpu.vector_store %arg7[%c0_30, %c0_31, %c1_32, %c0_33], %30 {strides = array<i32>} : memref<1x1x2x8xf32, #tpu.memory_space<vmem>>, vector<1x1x1x8xf32>,
    return
  }
  func.func @transform_0(%arg0: i32, %arg1: i32) -> (i32, i32, i32, i32) {
    %c0_i32 = arith.constant 0 : i32
    %0 = arith.addi %arg1, %c0_i32 : i32
    %c0_i32_0 = arith.constant 0 : i32
    %c0_i32_1 = arith.constant 0 : i32
    %c0_i32_2 = arith.constant 0 : i32
    return %arg0, %0, %c0_i32_0, %c0_i32_1 : i32, i32, i32, i32
  }
  func.func @transform_1(%arg0: i32, %arg1: i32) -> (i32, i32, i32, i32) {
    %c1_i32 = arith.constant 1 : i32
    %0 = arith.addi %arg1, %c1_i32 : i32
    %c0_i32 = arith.constant 0 : i32
    %c0_i32_0 = arith.constant 0 : i32
    %c0_i32_1 = arith.constant 0 : i32
    return %arg0, %0, %c0_i32, %c0_i32_0 : i32, i32, i32, i32
  }
  func.func @transform_2(%arg0: i32, %arg1: i32) -> (i32, i32, i32, i32) {
    %c2_i32 = arith.constant 2 : i32
    %0 = arith.addi %arg1, %c2_i32 : i32
    %c0_i32 = arith.constant 0 : i32
    %c0_i32_0 = arith.constant 0 : i32
    %c0_i32_1 = arith.constant 0 : i32
    return %arg0, %0, %c0_i32, %c0_i32_0 : i32, i32, i32, i32
  }
  func.func @transform_3(%arg0: i32, %arg1: i32) -> (i32, i32, i32) {
    %c0_i32 = arith.constant 0 : i32
    %c0_i32_0 = arith.constant 0 : i32
    %c0_i32_1 = arith.constant 0 : i32
    %c0_i32_2 = arith.constant 0 : i32
    return %c0_i32, %c0_i32_0, %c0_i32_1 : i32, i32, i32
  }
  func.func @transform_4(%arg0: i32, %arg1: i32) -> (i32, i32, i32, i32) {
    %c0_i32 = arith.constant 0 : i32
    %c0_i32_0 = arith.constant 0 : i32
    %c0_i32_1 = arith.constant 0 : i32
    return %arg0, %arg1, %c0_i32, %c0_i32_0 : i32, i32, i32, i32
  }
  func.func @transform_5(%arg0: i32, %arg1: i32) -> (i32, i32, i32, i32) {
    %c0_i32 = arith.constant 0 : i32
    %c0_i32_0 = arith.constant 0 : i32
    %c0_i32_1 = arith.constant 0 : i32
    return %arg0, %arg1, %c0_i32, %c0_i32_0 : i32, i32, i32, i32
  }
}

module attributes {stable_mosaic.version = 11 : i64} {
  func.func @_conv3x3_rows_kernel(%arg0: i32, %arg1: i32, %arg2: memref<1x1x16x24xf32, #tpu.memory_space<vmem>>, %arg3: memref<1x1x16x24xf32, #tpu.memory_space<vmem>>, %arg4: memref<1x1x16x24xf32, #tpu.memory_space<vmem>>, %arg5: memref<3x24x8xf32, #tpu.memory_space<vmem>>, %arg6: memref<1x1x16x8xf32, #tpu.memory_space<vmem>>, %arg7: memref<1x1x2x8xf32, #tpu.memory_space<vmem>>) attributes {dimension_semantics = [#tpu.dimension_semantics<parallel>, #tpu.dimension_semantics<parallel>], iteration_bounds = array<i64: 2, 16>, scalar_prefetch = 0 : i64, scratch_operands = 0 : i64, tpu.core_type = #tpu.core_type<tc>, window_params = [{transform_indices = @transform_0, window_bounds = array<i64: 1, 1, 16, 24>}, {transform_indices = @transform_1, window_bounds = array<i64: 1, 1, 16, 24>}, {transform_indices = @transform_2, window_bounds = array<i64: 1, 1, 16, 24>}, {pipeline_mode = #tpu.pipeline_mode<synchronous>, transform_indices = @transform_3, window_bounds = array<i64: 3, 24, 8>}, {transform_indices = @transform_4, window_bounds = array<i64: 1, 1, 16, 8>}, {transform_indices = @transform_5, window_bounds = array<i64: 1, 1, 2, 8>}]} {
    %c0 = arith.constant 0 : index
    %c0_0 = arith.constant 0 : index
    %c0_1 = arith.constant 0 : index
    %c0_2 = arith.constant 0 : index
    %0 = vector.load %arg2[%c0, %c0_0, %c0_1, %c0_2] : memref<1x1x16x24xf32, #tpu.memory_space<vmem>>, vector<1x1x16x24xf32>
    %1 = vector.shape_cast %0 : vector<1x1x16x24xf32> to vector<16x24xf32>
    %c0_3 = arith.constant 0 : index
    %c0_4 = arith.constant 0 : index
    %c0_5 = arith.constant 0 : index
    %2 = vector.load %arg5[%c0_3, %c0_4, %c0_5] : memref<3x24x8xf32, #tpu.memory_space<vmem>>, vector<1x24x8xf32>
    %3 = vector.shape_cast %2 : vector<1x24x8xf32> to vector<24x8xf32>
    %cst = arith.constant dense<0.000000e+00> : vector<16x8xf32>
    %4 = tpu.matmul %1, %3, %cst {dimension_numbers = #tpu.dot_dimension_numbers<[1], [0], [0], [1], [0, 0, 1, 1], [], []>} : vector<16x24xf32>, vector<24x8xf32>, vector<16x8xf32> -> vector<16x8xf32>
    %c0_6 = arith.constant 0 : index
    %c0_7 = arith.constant 0 : index
    %c0_8 = arith.constant 0 : index
    %c0_9 = arith.constant 0 : index
    %5 = vector.load %arg3[%c0_6, %c0_7, %c0_8, %c0_9] : memref<1x1x16x24xf32, #tpu.memory_space<vmem>>, vector<1x1x16x24xf32>
    %6 = vector.shape_cast %5 : vector<1x1x16x24xf32> to vector<16x24xf32>
    %c1 = arith.constant 1 : index
    %c0_10 = arith.constant 0 : index
    %c0_11 = arith.constant 0 : index
    %7 = vector.load %arg5[%c1, %c0_10, %c0_11] : memref<3x24x8xf32, #tpu.memory_space<vmem>>, vector<1x24x8xf32>
    %8 = vector.shape_cast %7 : vector<1x24x8xf32> to vector<24x8xf32>
    %cst_12 = arith.constant dense<0.000000e+00> : vector<16x8xf32>
    %9 = tpu.matmul %6, %8, %cst_12 {dimension_numbers = #tpu.dot_dimension_numbers<[1], [0], [0], [1], [0, 0, 1, 1], [], []>} : vector<16x24xf32>, vector<24x8xf32>, vector<16x8xf32> -> vector<16x8xf32>
    %10 = arith.addf %4, %9 : vector<16x8xf32>
    %c0_13 = arith.constant 0 : index
    %c0_14 = arith.constant 0 : index
    %c0_15 = arith.constant 0 : index
    %c0_16 = arith.constant 0 : index
    %11 = vector.load %arg4[%c0_13, %c0_14, %c0_15, %c0_16] : memref<1x1x16x24xf32, #tpu.memory_space<vmem>>, vector<1x1x16x24xf32>
    %12 = vector.shape_cast %11 : vector<1x1x16x24xf32> to vector<16x24xf32>
    %c2 = arith.constant 2 : index
    %c0_17 = arith.constant 0 : index
    %c0_18 = arith.constant 0 : index
    %13 = vector.load %arg5[%c2, %c0_17, %c0_18] : memref<3x24x8xf32, #tpu.memory_space<vmem>>, vector<1x24x8xf32>
    %14 = vector.shape_cast %13 : vector<1x24x8xf32> to vector<24x8xf32>
    %cst_19 = arith.constant dense<0.000000e+00> : vector<16x8xf32>
    %15 = tpu.matmul %12, %14, %cst_19 {dimension_numbers = #tpu.dot_dimension_numbers<[1], [0], [0], [1], [0, 0, 1, 1], [], []>} : vector<16x24xf32>, vector<24x8xf32>, vector<16x8xf32> -> vector<16x8xf32>
    %16 = arith.addf %10, %15 : vector<16x8xf32>
    %c0_20 = arith.constant 0 : index
    %c0_21 = arith.constant 0 : index
    %c0_22 = arith.constant 0 : index
    %c0_23 = arith.constant 0 : index
    %17 = vector.load %arg6[%c0_20, %c0_21, %c0_22, %c0_23] : memref<1x1x16x8xf32, #tpu.memory_space<vmem>>, vector<1x1x16x8xf32>
    %18 = vector.shape_cast %17 : vector<1x1x16x8xf32> to vector<16x8xf32>
    %19 = vector.shape_cast %16 : vector<16x8xf32> to vector<1x1x16x8xf32>
    tpu.vector_store %arg6[%c0_20, %c0_21, %c0_22, %c0_23], %19 {strides = array<i32>} : memref<1x1x16x8xf32, #tpu.memory_space<vmem>>, vector<1x1x16x8xf32>,
    %cst_24 = arith.constant dense<0.000000e+00> : vector<8xf32>
    %20 = vector.multi_reduction <add>, %16, %cst_24 [0] : vector<16x8xf32> to vector<8xf32>
    %21 = vector.shape_cast %20 : vector<8xf32> to vector<1x8xf32>
    %c0_25 = arith.constant 0 : index
    %c0_26 = arith.constant 0 : index
    %c0_27 = arith.constant 0 : index
    %c0_28 = arith.constant 0 : index
    %22 = vector.load %arg7[%c0_25, %c0_26, %c0_27, %c0_28] : memref<1x1x2x8xf32, #tpu.memory_space<vmem>>, vector<1x1x1x8xf32>
    %23 = vector.shape_cast %22 : vector<1x1x1x8xf32> to vector<1x8xf32>
    %24 = vector.shape_cast %21 : vector<1x8xf32> to vector<1x1x1x8xf32>
    tpu.vector_store %arg7[%c0_25, %c0_26, %c0_27, %c0_28], %24 {strides = array<i32>} : memref<1x1x2x8xf32, #tpu.memory_space<vmem>>, vector<1x1x1x8xf32>,
    %25 = arith.mulf %16, %16 : vector<16x8xf32>
    %cst_29 = arith.constant dense<0.000000e+00> : vector<8xf32>
    %26 = vector.multi_reduction <add>, %25, %cst_29 [0] : vector<16x8xf32> to vector<8xf32>
    %27 = vector.shape_cast %26 : vector<8xf32> to vector<1x8xf32>
    %c0_30 = arith.constant 0 : index
    %c0_31 = arith.constant 0 : index
    %c1_32 = arith.constant 1 : index
    %c0_33 = arith.constant 0 : index
    %28 = vector.load %arg7[%c0_30, %c0_31, %c1_32, %c0_33] : memref<1x1x2x8xf32, #tpu.memory_space<vmem>>, vector<1x1x1x8xf32>
    %29 = vector.shape_cast %28 : vector<1x1x1x8xf32> to vector<1x8xf32>
    %30 = vector.shape_cast %27 : vector<1x8xf32> to vector<1x1x1x8xf32>
    tpu.vector_store %arg7[%c0_30, %c0_31, %c1_32, %c0_33], %30 {strides = array<i32>} : memref<1x1x2x8xf32, #tpu.memory_space<vmem>>, vector<1x1x1x8xf32>,
    return
  }
  func.func @transform_0(%arg0: i32, %arg1: i32) -> (i32, i32, i32, i32) {
    %c0_i32 = arith.constant 0 : i32
    %0 = arith.addi %arg1, %c0_i32 : i32
    %c0_i32_0 = arith.constant 0 : i32
    %c0_i32_1 = arith.constant 0 : i32
    %c0_i32_2 = arith.constant 0 : i32
    return %arg0, %0, %c0_i32_0, %c0_i32_1 : i32, i32, i32, i32
  }
  func.func @transform_1(%arg0: i32, %arg1: i32) -> (i32, i32, i32, i32) {
    %c1_i32 = arith.constant 1 : i32
    %0 = arith.addi %arg1, %c1_i32 : i32
    %c0_i32 = arith.constant 0 : i32
    %c0_i32_0 = arith.constant 0 : i32
    %c0_i32_1 = arith.constant 0 : i32
    return %arg0, %0, %c0_i32, %c0_i32_0 : i32, i32, i32, i32
  }
  func.func @transform_2(%arg0: i32, %arg1: i32) -> (i32, i32, i32, i32) {
    %c2_i32 = arith.constant 2 : i32
    %0 = arith.addi %arg1, %c2_i32 : i32
    %c0_i32 = arith.constant 0 : i32
    %c0_i32_0 = arith.constant 0 : i32
    %c0_i32_1 = arith.constant 0 : i32
    return %arg0, %0, %c0_i32, %c0_i32_0 : i32, i32, i32, i32
  }
  func.func @transform_3(%arg0: i32, %arg1: i32) -> (i32, i32, i32) {
    %c0_i32 = arith.constant 0 : i32
    %c0_i32_0 = arith.constant 0 : i32
    %c0_i32_1 = arith.constant 0 : i32
    %c0_i32_2 = arith.constant 0 : i32
    return %c0_i32, %c0_i32_0, %c0_i32_1 : i32, i32, i32
  }
  func.func @transform_4(%arg0: i32, %arg1: i32) -> (i32, i32, i32, i32) {
    %c0_i32 = arith.constant 0 : i32
    %c0_i32_0 = arith.constant 0 : i32
    %c0_i32_1 = arith.constant 0 : i32
    return %arg0, %arg1, %c0_i32, %c0_i32_0 : i32, i32, i32, i32
  }
  func.func @transform_5(%arg0: i32, %arg1: i32) -> (i32, i32, i32, i32) {
    %c0_i32 = arith.constant 0 : i32
    %c0_i32_0 = arith.constant 0 : i32
    %c0_i32_1 = arith.constant 0 : i32
    return %arg0, %arg1, %c0_i32, %c0_i32_0 : i32, i32, i32, i32
  }
}

module attributes {stable_mosaic.version = 11 : i64} {
  func.func @_bn_relu_kernel(%arg0: i32, %arg1: memref<32x128xf32, #tpu.memory_space<vmem>>, %arg2: memref<1x128xf32, #tpu.memory_space<vmem>>, %arg3: memref<1x128xf32, #tpu.memory_space<vmem>>, %arg4: memref<32x128xf32, #tpu.memory_space<vmem>>) attributes {dimension_semantics = [#tpu.dimension_semantics<parallel>], iteration_bounds = array<i64: 1>, scalar_prefetch = 0 : i64, scratch_operands = 0 : i64, tpu.core_type = #tpu.core_type<tc>, window_params = [{transform_indices = @transform_0, window_bounds = array<i64: 32, 128>}, {pipeline_mode = #tpu.pipeline_mode<synchronous>, transform_indices = @transform_1, window_bounds = array<i64: 1, 128>}, {pipeline_mode = #tpu.pipeline_mode<synchronous>, transform_indices = @transform_2, window_bounds = array<i64: 1, 128>}, {transform_indices = @transform_3, window_bounds = array<i64: 32, 128>}]} {
    %c0 = arith.constant 0 : index
    %c0_0 = arith.constant 0 : index
    %0 = vector.load %arg1[%c0, %c0_0] : memref<32x128xf32, #tpu.memory_space<vmem>>, vector<32x128xf32>
    %c0_1 = arith.constant 0 : index
    %c0_2 = arith.constant 0 : index
    %1 = vector.load %arg2[%c0_1, %c0_2] : memref<1x128xf32, #tpu.memory_space<vmem>>, vector<1x128xf32>
    %2 = vector.broadcast %1 : vector<1x128xf32> to vector<32x128xf32>
    %3 = arith.mulf %0, %2 : vector<32x128xf32>
    %c0_3 = arith.constant 0 : index
    %c0_4 = arith.constant 0 : index
    %4 = vector.load %arg3[%c0_3, %c0_4] : memref<1x128xf32, #tpu.memory_space<vmem>>, vector<1x128xf32>
    %5 = vector.broadcast %4 : vector<1x128xf32> to vector<32x128xf32>
    %6 = arith.addf %3, %5 : vector<32x128xf32>
    %cst = arith.constant 0.000000e+00 : f32
    %7 = vector.broadcast %cst : f32 to vector<32x128xf32>
    %8 = arith.maximumf %6, %7 : vector<32x128xf32>
    %c0_5 = arith.constant 0 : index
    %c0_6 = arith.constant 0 : index
    %9 = vector.load %arg4[%c0_5, %c0_6] : memref<32x128xf32, #tpu.memory_space<vmem>>, vector<32x128xf32>
    tpu.vector_store %arg4[%c0_5, %c0_6], %8 {strides = array<i32>} : memref<32x128xf32, #tpu.memory_space<vmem>>, vector<32x128xf32>,
    return
  }
  func.func @transform_0(%arg0: i32) -> (i32, i32) {
    %c0_i32 = arith.constant 0 : i32
    %c0_i32_0 = arith.constant 0 : i32
    return %arg0, %c0_i32 : i32, i32
  }
  func.func @transform_1(%arg0: i32) -> (i32, i32) {
    %c0_i32 = arith.constant 0 : i32
    %c0_i32_0 = arith.constant 0 : i32
    %c0_i32_1 = arith.constant 0 : i32
    return %c0_i32, %c0_i32_0 : i32, i32
  }
  func.func @transform_2(%arg0: i32) -> (i32, i32) {
    %c0_i32 = arith.constant 0 : i32
    %c0_i32_0 = arith.constant 0 : i32
    %c0_i32_1 = arith.constant 0 : i32
    return %c0_i32, %c0_i32_0 : i32, i32
  }
  func.func @transform_3(%arg0: i32) -> (i32, i32) {
    %c0_i32 = arith.constant 0 : i32
    %c0_i32_0 = arith.constant 0 : i32
    return %arg0, %c0_i32 : i32, i32
  }
}

</mosaic_0001>

<bundles_post_ra>
// kernel: tile.18
= control target key start
LH: loop header
LB: loop body
LE: loop exit
PB: predicated region body
PF: predicated region fallthrough
CT: control target
= control target key end

     0   :  { %s22_s0 = inlined_call_operand.vmem [shape: f32[8], index: 0, kind: input, shape index: {}]   ;;  %s23_s1 = inlined_call_operand.vmem [shape: f32[2,8], index: 1, kind: output, shape index: {}]  }
   0x1   :  { %v4_v0 = vld [vmem:[%s22_s0] ss:$0 sm:$0xff] }
   0x2   :  { %5 = vst [vmem:[%s23_s1] sm:$0x3] %v4_v0 }

// kernel: tile.19
= control target key start
LH: loop header
LB: loop body
LE: loop exit
PB: predicated region body
PF: predicated region fallthrough
CT: control target
= control target key end

     0   :  { %vm7_vm0 = vcmask 64512   ;;  %vm13_vm1 = vcmask 130112   ;;  %s39_s0 = inlined_call_operand.vmem [shape: f32[2,8], index: 0, kind: input, shape index: {}]   ;;  %s40_s1 = inlined_call_operand.vmem [shape: f32[1,16], index: 1, kind: output, shape index: {}]  }
   0x1   :  { %v4_v0 = vld [vmem:[%s39_s0] sm:$0x3]  ;;  %s22_s0 = smov 8  }
   0x2   :  { %5 = vst [vmem:[#allocation1] sm:$0x3] %v4_v0 }
   0x9   :  { %v10_v1 = vld [vmem:[#allocation1 + $0x1] sm:$0x1]   ;;  %v6_v2 = vld [vmem:[#allocation1] sm:$0x1]  }
   0xa   :  { %11 = vrot.lane.b32.xlu0 %v10_v1, %s22_s0  ;;  %8 = vst.msk [vmem:[#allocation0] sm:$0x1] %vm7_vm0, %v6_v2  }
  0x7c   :  { %v12_v3 = vpop.permute.xlu0 %11  }
  0x7d   :  { %14 = vst.msk [vmem:[#allocation0] sm:$0x1] %vm13_vm1, %v12_v3  }
  0x84   :  { %v18_v4 = vld [vmem:[#allocation0] sm:$0x1] }
  0x85   :  { %20 = vst [vmem:[%s40_s1] sm:$0x1] %v18_v4 }

// kernel: decoder_block_forward.4
= control target key start
LH: loop header
LB: loop body
LE: loop exit
PB: predicated region body
PF: predicated region fallthrough
CT: control target
= control target key end

     0   :  { %vm38_vm0 = vcmask 64512   ;;  %vm379_vm1 = vcmask 130048   ;;  %s824_s1 = inlined_call_operand.vmem [shape: f32[2,8,16], index: 1, kind: input, shape index: {}]   ;;  %s825_s0 = inlined_call_operand.vmem [shape: f32[128,8], index: 0, kind: input, shape index: {}]   ;;  %s826_s2 = inlined_call_operand.vmem [shape: f32[1,16], index: 2, kind: input, shape index: {}]   ;;  %s827_s3 = inlined_call_operand.vmem [shape: f32[16,2,8,16], index: 3, kind: output, shape index: {}]  }
   0x1   :  { %v31_v0 = vld [vmem:[%s824_s1] sm:$0xff]  ;;  %v434_v1 = vld [vmem:[%s824_s1 + $0x8] sm:$0xff]  ;;  %v16_v4 = vld [vmem:[%s825_s0 + $0x10] sm:$0xff] }
   0x2   :  { %v14_v2 = vld [vmem:[%s825_s0] sm:$0xff]  ;;  %501 = vmatprep.subr.mxu0 %v31_v0  ;;  %527 = vmatprep.subr.mxu1 %v434_v1  ;;  %v15_v3 = vld [vmem:[%s825_s0 + $0x8] sm:$0xff]  ;;  %v17_v5 = vld [vmem:[%s825_s0 + $0x18] sm:$0xff] }
   0x3   :  { %502 = vmatpush3.msra.mxu0 %v31_v0  ;;  %503 = vmatprep.mubr.msk.f32.mxu0 %vm38_vm0, %v14_v2  ;;  %v18_v6 = vld [vmem:[%s825_s0 + $0x20] sm:$0xff]  ;;  %v19_v7 = vld [vmem:[%s825_s0 + $0x28] sm:$0xff]  ;;  %v20_v8 = vld [vmem:[%s825_s0 + $0x30] sm:$0xff] }
   0x4   :  { %528 = vmatpush3.msra.mxu1 %v434_v1  ;;  %529 = vmatprep.mubr.msk.f32.mxu1 %vm38_vm0, %v14_v2  ;;  %v21_v9 = vld [vmem:[%s825_s0 + $0x38] sm:$0xff]  ;;  %v22_v10 = vld [vmem:[%s825_s0 + $0x40] sm:$0xff]  ;;  %v23_v11 = vld [vmem:[%s825_s0 + $0x48] sm:$0xff] }
   0x5   :  { %504 = vmatmul.mubr.msk.f32.vlgmr.msra.gmra.mrb[0].mxu0 %vm38_vm0, %v15_v3  ;;  %530 = vmatmul.mubr.msk.f32.vlgmr.msra.gmra.mrb[0].mxu1 %vm38_vm0, %v15_v3  ;;  %v24_v12 = vld [vmem:[%s825_s0 + $0x50] sm:$0xff]  ;;  %v25_v13 = vld [vmem:[%s825_s0 + $0x58] sm:$0xff]  ;;  %v26_v14 = vld [vmem:[%s825_s0 + $0x60] sm:$0xff] }
   0x6   :  { %506 = vmatprep.mubr.msk.f32.mxu0 %vm38_vm0, %v16_v4  ;;  %532 = vmatprep.mubr.msk.f32.mxu1 %vm38_vm0, %v16_v4  ;;  %v27_v15 = vld [vmem:[%s825_s0 + $0x68] sm:$0xff]  ;;  %v28_v16 = vld [vmem:[%s825_s0 + $0x70] sm:$0xff]  ;;  %v29_v17 = vld [vmem:[%s825_s0 + $0x78] sm:$0xff] }
   0x7   :  { %v662_v18 = vld [vmem:[%s826_s2] ss:$0 sm:$0xff] }
   0x9   :  { %507 = vmatmul.mubr.msk.f32.gmra.mrb[2].mxu0 %vm38_vm0, %v17_v5  ;;  %533 = vmatmul.mubr.msk.f32.gmra.mrb[2].mxu1 %vm38_vm0, %v17_v5 }
   0xa   :  { %509 = vmatprep.mubr.msk.f32.mxu0 %vm38_vm0, %v18_v6  ;;  %535 = vmatprep.mubr.msk.f32.mxu1 %vm38_vm0, %v18_v6 }
   0xd   :  { %510 = vmatmul.mubr.msk.f32.gmra.mrb[4].mxu0 %vm38_vm0, %v19_v7  ;;  %536 = vmatmul.mubr.msk.f32.gmra.mrb[4].mxu1 %vm38_vm0, %v19_v7 }
   0xe   :  { %512 = vmatprep.mubr.msk.f32.mxu0 %vm38_vm0, %v20_v8  ;;  %538 = vmatprep.mubr.msk.f32.mxu1 %vm38_vm0, %v20_v8 }
  0x11   :  { %513 = vmatmul.mubr.msk.f32.gmra.mrb[6].mxu0 %vm38_vm0, %v21_v9  ;;  %539 = vmatmul.mubr.msk.f32.gmra.mrb[6].mxu1 %vm38_vm0, %v21_v9 }
  0x12   :  { %515 = vmatprep.mubr.msk.f32.mxu0 %vm38_vm0, %v22_v10  ;;  %541 = vmatprep.mubr.msk.f32.mxu1 %vm38_vm0, %v22_v10 }
  0x15   :  { %516 = vmatmul.mubr.msk.f32.gmra.mrb[8].mxu0 %vm38_vm0, %v23_v11  ;;  %542 = vmatmul.mubr.msk.f32.gmra.mrb[8].mxu1 %vm38_vm0, %v23_v11 }
  0x16   :  { %518 = vmatprep.mubr.msk.f32.mxu0 %vm38_vm0, %v24_v12  ;;  %544 = vmatprep.mubr.msk.f32.mxu1 %vm38_vm0, %v24_v12 }
  0x19   :  { %519 = vmatmul.mubr.msk.f32.gmra.mrb[10].mxu0 %vm38_vm0, %v25_v13  ;;  %545 = vmatmul.mubr.msk.f32.gmra.mrb[10].mxu1 %vm38_vm0, %v25_v13 }
  0x1a   :  { %521 = vmatprep.mubr.msk.f32.mxu0 %vm38_vm0, %v26_v14  ;;  %547 = vmatprep.mubr.msk.f32.mxu1 %vm38_vm0, %v26_v14 }
  0x1d   :  { %522 = vmatmul.mubr.msk.f32.gmra.mrb[12].mxu0 %vm38_vm0, %v27_v15  ;;  %548 = vmatmul.mubr.msk.f32.gmra.mrb[12].mxu1 %vm38_vm0, %v27_v15 }
  0x1e   :  { %524 = vmatprep.mubr.msk.f32.mxu0 %vm38_vm0, %v28_v16  ;;  %550 = vmatprep.mubr.msk.f32.mxu1 %vm38_vm0, %v28_v16 }
  0x21   :  { %525 = vmatmul.mubr.msk.f32.gmra.mrb[14].mxu0 %vm38_vm0, %v29_v17  ;;  %551 = vmatmul.mubr.msk.f32.gmra.mrb[14].mxu1 %vm38_vm0, %v29_v17 }
  0xd8   :  { %v505_v19 = vpop.f32.mrb[0].mxu0  ;;  %v531_v20 = vpop.f32.mrb[0].mxu1 }
  0xd9   :  { %v159_v21 = vadd.f32 %v505_v19, %v662_v18  ;;  %v306_v22 = vadd.f32 %v531_v20, %v662_v18  ;;  %v153_v23 = vpop.f32.mrb[1].mxu0  ;;  %v300_v24 = vpop.f32.mrb[1].mxu1 }
  0xda   :  { %v154_v25 = vadd.f32 %v662_v18, %v153_v23  ;;  %v301_v26 = vadd.f32 %v662_v18, %v300_v24 }
  0xdb   :  { %381 = vst.msk [vmem:[%s827_s3 + $0x10] sm:$0xff] %vm379_vm1, %v159_v21  ;;  %452 = vst.msk [vmem:[%s827_s3 + $0x18] sm:$0xff] %vm379_vm1, %v306_v22 }
  0xdc   :  { %380 = vst.msk [vmem:[%s827_s3] sm:$0xff] %vm379_vm1, %v154_v25  ;;  %451 = vst.msk [vmem:[%s827_s3 + $0x8] sm:$0xff] %vm379_vm1, %v301_v26  ;;  %v508_v27 = vpop.f32.mrb[2].mxu0  ;;  %v534_v28 = vpop.f32.mrb[2].mxu1 }
  0xdd   :  { %v169_v29 = vadd.f32 %v508_v27, %v662_v18  ;;  %v316_v30 = vadd.f32 %v534_v28, %v662_v18  ;;  %v163_v31 = vpop.f32.mrb[3].mxu0  ;;  %v310_v32 = vpop.f32.mrb[3].mxu1 }
  0xde   :  { %v164_v33 = vadd.f32 %v662_v18, %v163_v31  ;;  %v311_v34 = vadd.f32 %v662_v18, %v310_v32 }
  0xdf   :  { %383 = vst.msk [vmem:[%s827_s3 + $0x30] sm:$0xff] %vm379_vm1, %v169_v29  ;;  %454 = vst.msk [vmem:[%s827_s3 + $0x38] sm:$0xff] %vm379_vm1, %v316_v30 }
  0xe0   :  { %382 = vst.msk [vmem:[%s827_s3 + $0x20] sm:$0xff] %vm379_vm1, %v164_v33  ;;  %453 = vst.msk [vmem:[%s827_s3 + $0x28] sm:$0xff] %vm379_vm1, %v311_v34  ;;  %v511_v35 = vpop.f32.mrb[4].mxu0  ;;  %v537_v36 = vpop.f32.mrb[4].mxu1 }
  0xe1   :  { %v179_v37 = vadd.f32 %v511_v35, %v662_v18  ;;  %v326_v38 = vadd.f32 %v537_v36, %v662_v18  ;;  %v173_v39 = vpop.f32.mrb[5].mxu0  ;;  %v320_v40 = vpop.f32.mrb[5].mxu1 }
  0xe2   :  { %v174_v41 = vadd.f32 %v662_v18, %v173_v39  ;;  %v321_v42 = vadd.f32 %v662_v18, %v320_v40 }
  0xe3   :  { %385 = vst.msk [vmem:[%s827_s3 + $0x50] sm:$0xff] %vm379_vm1, %v179_v37  ;;  %456 = vst.msk [vmem:[%s827_s3 + $0x58] sm:$0xff] %vm379_vm1, %v326_v38 }
  0xe4   :  { %384 = vst.msk [vmem:[%s827_s3 + $0x40] sm:$0xff] %vm379_vm1, %v174_v41  ;;  %455 = vst.msk [vmem:[%s827_s3 + $0x48] sm:$0xff] %vm379_vm1, %v321_v42  ;;  %v514_v43 = vpop.f32.mrb[6].mxu0  ;;  %v540_v44 = vpop.f32.mrb[6].mxu1 }
  0xe5   :  { %v189_v45 = vadd.f32 %v514_v43, %v662_v18  ;;  %v336_v46 = vadd.f32 %v540_v44, %v662_v18  ;;  %v183_v47 = vpop.f32.mrb[7].mxu0  ;;  %v330_v48 = vpop.f32.mrb[7].mxu1 }
  0xe6   :  { %v184_v49 = vadd.f32 %v662_v18, %v183_v47  ;;  %v331_v50 = vadd.f32 %v662_v18, %v330_v48 }
  0xe7   :  { %387 = vst.msk [vmem:[%s827_s3 + $0x70] sm:$0xff] %vm379_vm1, %v189_v45  ;;  %458 = vst.msk [vmem:[%s827_s3 + $0x78] sm:$0xff] %vm379_vm1, %v336_v46 }
  0xe8   :  { %386 = vst.msk [vmem:[%s827_s3 + $0x60] sm:$0xff] %vm379_vm1, %v184_v49  ;;  %457 = vst.msk [vmem:[%s827_s3 + $0x68] sm:$0xff] %vm379_vm1, %v331_v50  ;;  %v517_v51 = vpop.f32.mrb[8].mxu0  ;;  %v543_v52 = vpop.f32.mrb[8].mxu1 }
  0xe9   :  { %v199_v53 = vadd.f32 %v517_v51, %v662_v18  ;;  %v346_v54 = vadd.f32 %v543_v52, %v662_v18  ;;  %v193_v55 = vpop.f32.mrb[9].mxu0  ;;  %v340_v56 = vpop.f32.mrb[9].mxu1 }
  0xea   :  { %v194_v57 = vadd.f32 %v662_v18, %v193_v55  ;;  %v341_v58 = vadd.f32 %v662_v18, %v340_v56 }
  0xeb   :  { %389 = vst.msk [vmem:[%s827_s3 + $0x90] sm:$0xff] %vm379_vm1, %v199_v53  ;;  %460 = vst.msk [vmem:[%s827_s3 + $0x98] sm:$0xff] %vm379_vm1, %v346_v54 }
  0xec   :  { %388 = vst.msk [vmem:[%s827_s3 + $0x80] sm:$0xff] %vm379_vm1, %v194_v57  ;;  %459 = vst.msk [vmem:[%s827_s3 + $0x88] sm:$0xff] %vm379_vm1, %v341_v58  ;;  %v520_v59 = vpop.f32.mrb[10].mxu0  ;;  %v546_v60 = vpop.f32.mrb[10].mxu1 }
  0xed   :  { %v209_v61 = vadd.f32 %v520_v59, %v662_v18  ;;  %v356_v62 = vadd.f32 %v546_v60, %v662_v18  ;;  %v203_v63 = vpop.f32.mrb[11].mxu0  ;;  %v350_v0 = vpop.f32.mrb[11].mxu1 }
  0xee   :  { %v204_v1 = vadd.f32 %v662_v18, %v203_v63  ;;  %v351_v2 = vadd.f32 %v662_v18, %v350_v0 }
  0xef   :  { %391 = vst.msk [vmem:[%s827_s3 + $0xb0] sm:$0xff] %vm379_vm1, %v209_v61  ;;  %462 = vst.msk [vmem:[%s827_s3 + $0xb8] sm:$0xff] %vm379_vm1, %v356_v62 }
  0xf0   :  { %390 = vst.msk [vmem:[%s827_s3 + $0xa0] sm:$0xff] %vm379_vm1, %v204_v1  ;;  %461 = vst.msk [vmem:[%s827_s3 + $0xa8] sm:$0xff] %vm379_vm1, %v351_v2  ;;  %v523_v3 = vpop.f32.mrb[12].mxu0  ;;  %v549_v4 = vpop.f32.mrb[12].mxu1 }
  0xf1   :  { %v219_v5 = vadd.f32 %v523_v3, %v662_v18  ;;  %v366_v6 = vadd.f32 %v549_v4, %v662_v18  ;;  %v213_v7 = vpop.f32.mrb[13].mxu0  ;;  %v360_v8 = vpop.f32.mrb[13].mxu1 }
  0xf2   :  { %v214_v9 = vadd.f32 %v662_v18, %v213_v7  ;;  %v361_v10 = vadd.f32 %v662_v18, %v360_v8 }
  0xf3   :  { %393 = vst.msk [vmem:[%s827_s3 + $0xd0] sm:$0xff] %vm379_vm1, %v219_v5  ;;  %464 = vst.msk [vmem:[%s827_s3 + $0xd8] sm:$0xff] %vm379_vm1, %v366_v6 }
  0xf4   :  { %392 = vst.msk [vmem:[%s827_s3 + $0xc0] sm:$0xff] %vm379_vm1, %v214_v9  ;;  %463 = vst.msk [vmem:[%s827_s3 + $0xc8] sm:$0xff] %vm379_vm1, %v361_v10  ;;  %v526_v11 = vpop.f32.mrb[14].mxu0  ;;  %v552_v12 = vpop.f32.mrb[14].mxu1 }
  0xf5   :  { %v229_v13 = vadd.f32 %v526_v11, %v662_v18  ;;  %v376_v14 = vadd.f32 %v552_v12, %v662_v18  ;;  %v223_v15 = vpop.f32.mrb[15].mxu0  ;;  %v370_v16 = vpop.f32.mrb[15].mxu1 }
  0xf6   :  { %v224_v17 = vadd.f32 %v662_v18, %v223_v15  ;;  %v371_v19 = vadd.f32 %v662_v18, %v370_v16 }
  0xf7   :  { %395 = vst.msk [vmem:[%s827_s3 + $0xf0] sm:$0xff] %vm379_vm1, %v229_v13  ;;  %466 = vst.msk [vmem:[%s827_s3 + $0xf8] sm:$0xff] %vm379_vm1, %v376_v14 }
  0xf8   :  { %394 = vst.msk [vmem:[%s827_s3 + $0xe0] sm:$0xff] %vm379_vm1, %v224_v17  ;;  %465 = vst.msk [vmem:[%s827_s3 + $0xe8] sm:$0xff] %vm379_vm1, %v371_v19 }

// kernel: decoder_block_forward.5
= control target key start
LH: loop header
LB: loop body
LE: loop exit
PB: predicated region body
PF: predicated region fallthrough
CT: control target
= control target key end

     0   :  { %s1102_s18 = smov 0   ;;  %s1104_s19 = smov 0   ;;  %s1260_s0 = inlined_call_operand.vmem [shape: f32[2,18,16,48], index: 0, kind: input, shape index: {}, may-alias: {0,1,2}]   ;;  %s1261_s1 = inlined_call_operand.vmem [shape: f32[2,18,16,48], index: 1, kind: input, shape index: {}, may-alias: {0,1,2}]   ;;  %s1262_s2 = inlined_call_operand.vmem [shape: f32[2,18,16,48], index: 2, kind: input, shape index: {}, may-alias: {0,1,2}]   ;;  %s1263_s3 = inlined_call_operand.vmem [shape: f32[3,48,8], index: 3, kind: input, shape index: {}]   ;;  %s1264_s4 = inlined_call_operand.vmem [shape: f32[2,16,16,8], index: 4, kind: output, shape index: {0}]   ;;  %s1265_s5 = inlined_call_operand.vmem [shape: f32[2,16,2,8], index: 5, kind: output, shape index: {1}]  }
   0x1   :  { %s1106_s20 = smov 0   ;;  %s1108_s21 = smov 0  }
   0x2   :  { %s1110_s22 = smov 0  }
   0x3 LB: > { %s25_s23 = sadd.s32 1, %s1062_s20  ;;  %s28_s24 = sadd.s32 1, %s1066_s21  ;;  %s1070_s22 = sphi %s1110_s22, %s16_s22   ;;  %s1066_s21 = sphi %s1108_s21, %s1271_s21   ;;  %s1062_s20 = sphi %s1106_s20, %s1270_s20   ;;  %s1058_s19 = sphi %s1104_s19, %s1269_s19   ;;  %s1054_s18 = sphi %s1102_s18, %s1268_s18  }
   0x4   : > { %p26_p0 = scmp.ge.s32.totalorder %s25_s23, 16  ;;  %p850_p1 = scmp.ge.s32.totalorder %s1070_s22, 1 }
   0x5   : > { %p252_p2 = scmp.lt.s32.totalorder %s1070_s22, 33 }
   0x6   : > { %s1273_s23 = smov (%p26_p0, %s25_s23), 0  ;;  %s1275_s24 = smov (!%p26_p0, %s28_s24), %s1066_s21 }
   0x7   : > { %p253_p3 = pnand %p850_p1, %p252_p2  ;;  %p30_p4 = scmp.ge.s32.totalorder %s1275_s24, 2 }
   0x8   : > { %v366_v0 = vld [vmem:[%s1263_s3] sm:$0xff] (!%p253_p3)  ;;  %v367_v1 = vld [vmem:[%s1263_s3 + $0x8] sm:$0xff] (!%p253_p3)  ;;  %v368_v2 = vld [vmem:[%s1263_s3 + $0x10] sm:$0xff] (!%p253_p3)  ;;  %p316_p5 = scmp.lt.s32.totalorder (!%p253_p3), %s1058_s19, 1  ;;  %p318_p6 = scmp.lt.s32.totalorder (!%p253_p3), %s1054_s18, 17  ;;  %vm381_vm0 = vcmask (!%p253_p3), 392192  }
   0x9   : > { %s1277_s24 = smov (%p30_p4, %s1275_s24), 0  ;;  %256 = sbr.rel (%p253_p3) target bundleno = 270 (0x10e), region = 36 }
   0xa   : > { %v963_v3 = vpack.c.bf16 (!%p253_p3), %v367_v1, %v366_v0  ;;  %v369_v4 = vld [vmem:[%s1263_s3 + $0x18] sm:$0xff] (!%p253_p3)  ;;  %v370_v5 = vld [vmem:[%s1263_s3 + $0x20] sm:$0xff] (!%p253_p3)  ;;  %s325_s10 = sadd.s32 (!%p253_p3), 1, %s1054_s18  ;;  %s336_s11 = sadd.s32 (!%p253_p3), 2, %s1054_s18  ;;  %v371_v7 = vld [vmem:[%s1263_s3 + $0x28] sm:$0xff] (!%p253_p3)  ;;  %vm636_vm1 = vcmask (!%p253_p3), 64512  }
   0xb   : > { %v967_v6 = vpack.c.bf16 (!%p253_p3), %v369_v4, %v368_v2  ;;  %v862_v8 = vld [vmem:[%s1263_s3 + $0x30] sm:$0xff] (!%p253_p3)  ;;  %v863_v9 = vld [vmem:[%s1263_s3 + $0x38] sm:$0xff] (!%p253_p3)  ;;  %v864_v11 = vld [vmem:[%s1263_s3 + $0x40] sm:$0xff] (!%p253_p3)  ;;  %v971_v15 = vpack.c.bf16 (!%p253_p3), %v371_v7, %v370_v5  ;;  %p1181_p7 = scmp.lt.s32.totalorder (!%p253_p3), %s325_s10, 17  ;;  %p1194_p8 = scmp.lt.s32.totalorder (!%p253_p3), %s336_s11, 17  ;;  %vm648_vm2 = vcmask (!%p253_p3), 57344  }
   0xc   : > { %964 = vmatprep.subr.bf16.mxu0 (!%p253_p3), %v963_v3  ;;  %v951_v10 = vpack.c.bf16 (!%p253_p3), %v863_v9, %v862_v8  ;;  %v865_v12 = vld [vmem:[%s1263_s3 + $0x48] sm:$0xff] (!%p253_p3)  ;;  %v866_v14 = vld [vmem:[%s1263_s3 + $0x50] sm:$0xff] (!%p253_p3)  ;;  %v867_v16 = vld [vmem:[%s1263_s3 + $0x58] sm:$0xff] (!%p253_p3)  ;;  %p349_p9 = scmp.lt.s32.totalorder (!%p253_p3), %s1054_s18, 15 }
   0xd   : > { %966 = vmatpush3.bf16.msra.mxu0 (!%p253_p3), %v963_v3  ;;  %v955_v13 = vpack.c.bf16 (!%p253_p3), %v865_v12, %v864_v11  ;;  %v872_v17 = vld [vmem:[%s1263_s3 + $0x60] sm:$0xff] (!%p253_p3)  ;;  %v873_v18 = vld [vmem:[%s1263_s3 + $0x68] sm:$0xff] (!%p253_p3)  ;;  %v959_v19 = vpack.c.bf16 (!%p253_p3), %v867_v16, %v866_v14  ;;  %v874_v22 = vld [vmem:[%s1263_s3 + $0x70] sm:$0xff] (!%p253_p3) }
   0xe   : > { %968 = vmatprep.subr.bf16.mxu0 (!%p253_p3), %v967_v6  ;;  %952 = vmatprep.subr.bf16.mxu1 (!%p253_p3), %v951_v10  ;;  %v975_v21 = vpack.c.bf16 (!%p253_p3), %v873_v18, %v872_v17  ;;  %v875_v23 = vld [vmem:[%s1263_s3 + $0x78] sm:$0xff] (!%p253_p3)  ;;  %v876_v26 = vld [vmem:[%s1263_s3 + $0x80] sm:$0xff] (!%p253_p3)  ;;  %v877_v27 = vld [vmem:[%s1263_s3 + $0x88] sm:$0xff] (!%p253_p3) }
   0xf   : > { %954 = vmatpush3.bf16.msra.mxu1 (!%p253_p3), %v951_v10  ;;  %v979_v25 = vpack.c.bf16 (!%p253_p3), %v875_v23, %v874_v22  ;;  %v983_v31 = vpack.c.bf16 (!%p253_p3), %v877_v27, %v876_v26 }
  0x10   : > { %s1279_s19 = smov (!%p316_p5, %s1058_s19), 1  ;;  %956 = vmatprep.subr.bf16.mxu1 %v955_v13  ;;  %s1281_s10 = smov (!%p1181_p7, %s325_s10), 17 }
  0x11   : > { %s319_s25 = scalar_select %p318_p6, %s1054_s18, 17  ;;  %970 = vmatpush3.bf16.msra.mxu0 %v967_v6 }
  0x12   : > { %s1171_s30 = smul.u32 36, %s1279_s19  ;;  %972 = vmatprep.subr.bf16.mxu0 %v971_v15  ;;  %s1283_s11 = smov (!%p1194_p8, %s336_s11), 17 }
  0x13   : > { %s851_s8 = sshll.u32 %s319_s25, 1  ;;  %958 = vmatpush3.bf16.msra.mxu1 %v955_v13  ;;  %s855_s15 = sshll.u32 %s1283_s11, 1 }
  0x14   : > { %s322_s14 = sadd.s32 %s1171_s30, %s851_s8  ;;  %960 = vmatprep.subr.bf16.mxu1 %v959_v19  ;;  %s343_s17 = sadd.s32 %s1171_s30, %s855_s15 }
  0x15   : > { %s852_s27 = sshll.u32 %s322_s14, 3  ;;  %s853_s14 = sshll.u32 %s1281_s10, 1  ;;  %974 = vmatpush3.bf16.msra.mxu0 %v971_v15 }
  0x16   : > { %s324_s6 = scalar_lea.vmem %s1260_s0, %s852_s27  ;;  %s332_s13 = sadd.s32 %s1171_s30, %s853_s14  ;;  %976 = vmatprep.subr.bf16.mxu0 %v975_v21 }
  0x17   : > { %v364_v20 = vld [vmem:[%s324_s6] sm:$0xff]  ;;  %v365_v24 = vld [vmem:[%s324_s6 + $0x8] sm:$0xff]  ;;  %s854_s16 = sshll.u32 %s332_s13, 3  ;;  %962 = vmatpush3.bf16.msra.mxu1 %v959_v19  ;;  %s856_s6 = sshll.u32 %s343_s17, 3 }
  0x18   : > { %933 = vmatprep.mubr.msk.f32.mxu0 %vm381_vm0, %v364_v20  ;;  %s334_s10 = scalar_lea.vmem %s1261_s1, %s854_s16  ;;  %s345_s8 = scalar_lea.vmem %s1262_s2, %s856_s6 }
  0x19   : > { %934 = vmatmul.mubr.msk.f32.vlgmr.msra.gmra.mrb[0].mxu0 %vm381_vm0, %v365_v24  ;;  %v372_v28 = vld [vmem:[%s334_s10] sm:$0xff]  ;;  %v373_v29 = vld [vmem:[%s334_s10 + $0x8] sm:$0xff]  ;;  %s1285_s18 = smov (!%p349_p9, %s1054_s18), 15  ;;  %s858_s12 = sshll.u32 %s1279_s19, 5 }
  0x1a   : > { %978 = vmatpush3.bf16.msra.mxu0 %v975_v21  ;;  %918 = vmatprep.mubr.msk.f32.mxu1 %vm381_vm0, %v372_v28  ;;  %v544_v30 = vld [vmem:[%s345_s8] sm:$0xff]  ;;  %v545_v32 = vld [vmem:[%s345_s8 + $0x8] sm:$0xff]  ;;  %s857_s9 = sshll.u32 %s1285_s18, 1  ;;  %s860_s26 = sshll.u32 %s1279_s19, 4 }
  0x1b   : > { %980 = vmatprep.subr.bf16.mxu0 %v979_v25  ;;  %919 = vmatmul.mubr.msk.f32.vlgmr.msra.gmra.mrb[0].mxu1 %vm381_vm0, %v373_v29  ;;  %s353_s14 = sadd.s32 %s858_s12, %s857_s9  ;;  %s361_s27 = sadd.s32 %s860_s26, %s1285_s18 }
  0x1c   : > { %948 = vmatprep.mubr.msk.f32.mxu0 %vm381_vm0, %v544_v30  ;;  %s859_s13 = sshll.u32 %s353_s14, 3  ;;  %s861_s28 = sshll.u32 %s361_s27, 1 }
  0x1d   : > { %s355_s17 = scalar_lea.vmem %s1264_s4, %s859_s13  ;;  %s363_s7 = scalar_lea.vmem %s1265_s5, %s861_s28 }
  0x1e   : > { %982 = vmatpush3.bf16.msra.mxu0 %v979_v25 }
  0x1f   : > { %984 = vmatprep.subr.bf16.mxu0 %v983_v31 }
  0x22   : > { %986 = vmatpush3.bf16.msra.mxu0 %v983_v31 }
  0x25   : > { %949 = vmatmul.mubr.msk.f32.vlgmr.msra.gmra.mrb[0].mxu0 %vm381_vm0, %v545_v32 }
  0xee   : > { %v920_v33 = vpop.f32.mrb[0].mxu1 }
  0xef   : > { %v454_v34 = vpop.f32.mrb[1].mxu1 }
  0xf8   : > { %v950_v35 = vpop.f32.mrb[0].mxu0 }
  0xf9   : > { %v987_v36 = vadd.f32 %v950_v35, %v920_v33  ;;  %v625_v37 = vpop.f32.mrb[1].mxu0 }
  0xfa   : > { %v988_v38 = vadd.f32 %v625_v37, %v454_v34 }
  0xfb   : > { %638 = vst.msk [vmem:[%s355_s17 + $0x8] sm:$0xff] %vm636_vm1, %v987_v36  ;;  %v640_v39 = vsel %vm636_vm1, %v987_v36, 0.0  ;;  %v651_v40 = vmul.f32 %v987_v36, %v987_v36 }
  0xfc   : > { %637 = vst.msk [vmem:[%s355_s17] sm:$0xff] %vm636_vm1, %v988_v38  ;;  %v639_v41 = vsel %vm636_vm1, %v988_v38, 0.0  ;;  %v650_v42 = vmul.f32 %v988_v38, %v988_v38 }
  0xfd   : > { %v653_v43 = vsel %vm636_vm1, %v651_v40, 0.0  ;;  %v641_v44 = vadd.f32 %v640_v39, %v639_v41 }
  0xfe   : > { %v652_v45 = vsel %vm636_vm1, %v650_v42, 0.0 }
  0xff   : > { %v642_v46 = vrot.slane %v641_v44, 4  ;;  %v654_v47 = vadd.f32 %v653_v43, %v652_v45 }
 0x101   : > { %v643_v48 = vadd.f32 %v642_v46, %v641_v44  ;;  %v655_v49 = vrot.slane %v654_v47, 4 }
 0x103   : > { %v644_v50 = vrot.slane %v643_v48, 2  ;;  %v656_v51 = vadd.f32 %v655_v49, %v654_v47 }
 0x105   : > { %v645_v52 = vadd.f32 %v644_v50, %v643_v48  ;;  %v657_v53 = vrot.slane %v656_v51, 2 }
 0x107   : > { %v646_v54 = vrot.slane %v645_v52, 1  ;;  %v658_v55 = vadd.f32 %v657_v53, %v656_v51 }
 0x109   : > { %v647_v56 = vadd.f32 %v646_v54, %v645_v52  ;;  %v659_v57 = vrot.slane %v658_v55, 1 }
 0x10b   : > { %649 = vst.msk [vmem:[%s363_s7] sm:$0x1] %vm648_vm2, %v647_v56  ;;  %v660_v58 = vadd.f32 %v659_v57, %v658_v55 }
 0x10d   : > { %661 = vst.msk [vmem:[%s363_s7 + $0x1] sm:$0x1] %vm648_vm2, %v660_v58 }
 0x10e PF: > { %s16_s22 = sadd.s32 1, %s1070_s22   ;;  %s1268_s18 = smov %s1062_s20 }
 0x10f   : > { %p13_p10 = scmp.ge.s32.totalorder %s16_s22, 34   ;;  %s1269_s19 = smov %s1066_s21 }
 0x110   : > { %s1270_s20 = smov %s1273_s23  ;;  %s1271_s21 = smov %s1277_s24 }
 0x111   :  { %15 = sbr.rel (!%p13_p10) target bundleno = 3 (0x3), region = 86 }

// kernel: tile.23
= control target key start
LH: loop header
LB: loop body
LE: loop exit
PB: predicated region body
PF: predicated region fallthrough
CT: control target
= control target key end

     0   :  { %s28_s0 = inlined_call_operand.vmem [shape: f32[8], index: 0, kind: input, shape index: {}]   ;;  %s29_s1 = inlined_call_operand.vmem [shape: f32[16,8], index: 1, kind: output, shape index: {}]  }
   0x1   :  { %v4_v0 = vld [vmem:[%s28_s0] ss:$0 sm:$0xff] }
   0x2   :  { %5 = vst [vmem:[%s29_s1] sm:$0xff] %v4_v0  ;;  %8 = vst [vmem:[%s29_s1 + $0x8] sm:$0xff] %v4_v0 }

// kernel: tile.24
= control target key start
LH: loop header
LB: loop body
LE: loop exit
PB: predicated region body
PF: predicated region fallthrough
CT: control target
= control target key end

     0   :  { %s131_s10 = smov 120   ;;  %s132_s11 = smov 104   ;;  %vm3_vm0 = vcmask 64512   ;;  %vm9_vm1 = vcmask 1048512   ;;  %vm15_vm2 = vcmask 982912   ;;  %vm21_vm3 = vcmask 917312   ;;  %s207_s0 = inlined_call_operand.vmem [shape: f32[16,8], index: 0, kind: input, shape index: {}]   ;;  %s208_s1 = inlined_call_operand.vmem [shape: f32[1,128], index: 1, kind: output, shape index: {}]  }
   0x1   :  { %v101_v0 = vld [vmem:[%s207_s0 + $0xf] sm:$0x1]   ;;  %v103_v1 = vld [vmem:[%s207_s0 + $0xd] sm:$0x1]   ;;  %v102_v2 = vld [vmem:[%s207_s0 + $0xe] sm:$0x1]  }
   0x2   :  { %7 = vrot.lane.b32.xlu0 %v101_v0, %s131_s10  ;;  %19 = vrot.lane.b32.xlu1 %v103_v1, %s132_s11  ;;  %v104_v3 = vld [vmem:[%s207_s0 + $0xc] sm:$0x1]   ;;  %s133_s16 = smov 112   ;;  %s134_s17 = smov 96   ;;  %v105_v4 = vld [vmem:[%s207_s0 + $0xb] sm:$0x1]  }
   0x3   :  { %v106_v5 = vld [vmem:[%s207_s0 + $0xa] sm:$0x1]   ;;  %v2_v6 = vld [vmem:[%s207_s0] sm:$0x1]   ;;  %s135_s24 = smov 88   ;;  %s136_s25 = smov 80  }
   0x4   :  { %4 = vst.msk [vmem:[#allocation0] sm:$0x1] %vm3_vm0, %v2_v6   ;;  %v107_v7 = vld [vmem:[%s207_s0 + $0x9] sm:$0x1]   ;;  %v108_v8 = vld [vmem:[%s207_s0 + $0x8] sm:$0x1]  }
   0x5   :  { %s137_s30 = smov 72   ;;  %s138_s2 = smov 64   ;;  %v109_v9 = vld [vmem:[%s207_s0 + $0x7] sm:$0x1]   ;;  %v110_v10 = vld [vmem:[%s207_s0 + $0x6] sm:$0x1]  }
   0x6   :  { %13 = vrot.lane.b32.xlu0 %v102_v2, %s133_s16  ;;  %25 = vrot.lane.b32.xlu1 %v104_v3, %s134_s17  ;;  %s139_s7 = smov 56   ;;  %s140_s8 = smov 48   ;;  %v111_v11 = vld [vmem:[%s207_s0 + $0x5] sm:$0x1]   ;;  %v112_v12 = vld [vmem:[%s207_s0 + $0x4] sm:$0x1]  }
   0x7   :  { %s141_s13 = smov 40   ;;  %s142_s14 = smov 32   ;;  %v113_v13 = vld [vmem:[%s207_s0 + $0x3] sm:$0x1]   ;;  %v114_v14 = vld [vmem:[%s207_s0 + $0x2] sm:$0x1]  }
   0x8   :  { %s143_s19 = smov 24   ;;  %s144_s20 = smov 16   ;;  %v115_v15 = vld [vmem:[%s207_s0 + $0x1] sm:$0x1]   ;;  %vm27_vm4 = vcmask 851712   ;;  %vm33_vm5 = vcmask 786112  }
   0x9   :  { %s145_s0 = smov 8   ;;  %vm39_vm6 = vcmask 720512   ;;  %vm45_vm7 = vcmask 654912   ;;  %vm51_vm8 = vcmask 589312   ;;  %vm57_vm9 = vcmask 523712  }
   0xa   :  { %31 = vrot.lane.b32.xlu0 %v105_v4, %s135_s24  ;;  %37 = vrot.lane.b32.xlu1 %v106_v5, %s136_s25  ;;  %vm63_vm10 = vcmask 458112   ;;  %vm69_vm11 = vcmask 392512   ;;  %vm75_vm12 = vcmask 326912   ;;  %vm81_vm13 = vcmask 261312  }
   0xb   :  { %vm87_vm14 = vcmask 195712   ;;  %vm93_vm15 = vcmask 130112  }
   0xe   :  { %43 = vrot.lane.b32.xlu0 %v107_v7, %s137_s30  ;;  %49 = vrot.lane.b32.xlu1 %v108_v8, %s138_s2 }
  0x12   :  { %55 = vrot.lane.b32.xlu0 %v109_v9, %s139_s7  ;;  %61 = vrot.lane.b32.xlu1 %v110_v10, %s140_s8 }
  0x16   :  { %67 = vrot.lane.b32.xlu0 %v111_v11, %s141_s13  ;;  %73 = vrot.lane.b32.xlu1 %v112_v12, %s142_s14 }
  0x1a   :  { %79 = vrot.lane.b32.xlu0 %v113_v13, %s143_s19  ;;  %85 = vrot.lane.b32.xlu1 %v114_v14, %s144_s20 }
  0x1e   :  { %91 = vrot.lane.b32.xlu0 %v115_v15, %s145_s0 }
  0x74   :  { %v8_v16 = vpop.permute.xlu0 %7   ;;  %v20_v17 = vpop.permute.xlu1 %19  }
  0x75   :  { %10 = vst.msk [vmem:[#allocation0] sm:$0x1] %vm9_vm1, %v8_v16  }
  0x78   :  { %v14_v18 = vpop.permute.xlu0 %13   ;;  %v26_v19 = vpop.permute.xlu1 %25  }
  0x79   :  { %16 = vst.msk [vmem:[#allocation0] sm:$0x1] %vm15_vm2, %v14_v18  }
  0x7a   :  { %22 = vst.msk [vmem:[#allocation0] sm:$0x1] %vm21_vm3, %v20_v17  }
  0x7b   :  { %28 = vst.msk [vmem:[#allocation0] sm:$0x1] %vm27_vm4, %v26_v19  }
  0x7c   :  { %v32_v20 = vpop.permute.xlu0 %31   ;;  %v38_v21 = vpop.permute.xlu1 %37  }
  0x7d   :  { %34 = vst.msk [vmem:[#allocation0] sm:$0x1] %vm33_vm5, %v32_v20  }
  0x7e   :  { %40 = vst.msk [vmem:[#allocation0] sm:$0x1] %vm39_vm6, %v38_v21  }
  0x80   :  { %v44_v22 = vpop.permute.xlu0 %43   ;;  %v50_v23 = vpop.permute.xlu1 %49  }
  0x81   :  { %46 = vst.msk [vmem:[#allocation0] sm:$0x1] %vm45_vm7, %v44_v22  }
  0x82   :  { %52 = vst.msk [vmem:[#allocation0] sm:$0x1] %vm51_vm8, %v50_v23  }
  0x84   :  { %v56_v24 = vpop.permute.xlu0 %55   ;;  %v62_v25 = vpop.permute.xlu1 %61  }
  0x85   :  { %58 = vst.msk [vmem:[#allocation0] sm:$0x1] %vm57_vm9, %v56_v24  }
  0x86   :  { %64 = vst.msk [vmem:[#allocation0] sm:$0x1] %vm63_vm10, %v62_v25  }
  0x88   :  { %v68_v26 = vpop.permute.xlu0 %67   ;;  %v74_v27 = vpop.permute.xlu1 %73  }
  0x89   :  { %70 = vst.msk [vmem:[#allocation0] sm:$0x1] %vm69_vm11, %v68_v26  }
  0x8a   :  { %76 = vst.msk [vmem:[#allocation0] sm:$0x1] %vm75_vm12, %v74_v27  }
  0x8c   :  { %v80_v28 = vpop.permute.xlu0 %79   ;;  %v86_v29 = vpop.permute.xlu1 %85  }
  0x8d   :  { %82 = vst.msk [vmem:[#allocation0] sm:$0x1] %vm81_vm13, %v80_v28  }
  0x8e   :  { %88 = vst.msk [vmem:[#allocation0] sm:$0x1] %vm87_vm14, %v86_v29  }
  0x90   :  { %v92_v30 = vpop.permute.xlu0 %91  }
  0x91   :  { %94 = vst.msk [vmem:[#allocation0] sm:$0x1] %vm93_vm15, %v92_v30  }
  0x98   :  { %v98_v31 = vld [vmem:[#allocation0] sm:$0x1] }
  0x99   :  { %100 = vst [vmem:[%s208_s1] sm:$0x1] %v98_v31 }

// kernel: decoder_block_forward.6
= control target key start
LH: loop header
LB: loop body
LE: loop exit
PB: predicated region body
PF: predicated region fallthrough
CT: control target
= control target key end

     0   :  { %s1036_s18 = smov 0   ;;  %s1038_s19 = smov 0   ;;  %s1151_s0 = inlined_call_operand.vmem [shape: f32[2,18,16,24], index: 0, kind: input, shape index: {}, may-alias: {0,1,2}]   ;;  %s1152_s1 = inlined_call_operand.vmem [shape: f32[2,18,16,24], index: 1, kind: input, shape index: {}, may-alias: {0,1,2}]   ;;  %s1153_s2 = inlined_call_operand.vmem [shape: f32[2,18,16,24], index: 2, kind: input, shape index: {}, may-alias: {0,1,2}]   ;;  %s1154_s3 = inlined_call_operand.vmem [shape: f32[3,24,8], index: 3, kind: input, shape index: {}]   ;;  %s1155_s4 = inlined_call_operand.vmem [shape: f32[2,16,16,8], index: 4, kind: output, shape index: {0}]   ;;  %s1156_s5 = inlined_call_operand.vmem [shape: f32[2,16,2,8], index: 5, kind: output, shape index: {1}]  }
   0x1   :  { %s1040_s20 = smov 0   ;;  %s1042_s21 = smov 0  }
   0x2   :  { %s1044_s22 = smov 0  }
   0x3 LB: > { %s25_s23 = sadd.s32 1, %s996_s20  ;;  %s28_s24 = sadd.s32 1, %s1000_s21  ;;  %s1004_s22 = sphi %s1044_s22, %s16_s22   ;;  %s1000_s21 = sphi %s1042_s21, %s1160_s21   ;;  %s996_s20 = sphi %s1040_s20, %s1159_s20   ;;  %s992_s19 = sphi %s1038_s19, %s1158_s19   ;;  %s988_s18 = sphi %s1036_s18, %s1157_s18  }
   0x4   : > { %p26_p0 = scmp.ge.s32.totalorder %s25_s23, 16  ;;  %p841_p1 = scmp.ge.s32.totalorder %s1004_s22, 1 }
   0x5   : > { %p252_p2 = scmp.lt.s32.totalorder %s1004_s22, 33 }
   0x6   : > { %s1162_s23 = smov (%p26_p0, %s25_s23), 0  ;;  %s1164_s24 = smov (!%p26_p0, %s28_s24), %s1000_s21 }
   0x7   : > { %p253_p3 = pnand %p841_p1, %p252_p2  ;;  %p30_p4 = scmp.ge.s32.totalorder %s1164_s24, 2 }
   0x8   : > { %v366_v0 = vld [vmem:[%s1154_s3] sm:$0xff] (!%p253_p3)  ;;  %v367_v1 = vld [vmem:[%s1154_s3 + $0x8] sm:$0xff] (!%p253_p3)  ;;  %p316_p5 = scmp.lt.s32.totalorder (!%p253_p3), %s992_s19, 1  ;;  %p318_p6 = scmp.lt.s32.totalorder (!%p253_p3), %s988_s18, 17  ;;  %v368_v3 = vld [vmem:[%s1154_s3 + $0x10] sm:$0xff] (!%p253_p3)  ;;  %vm375_vm0 = vcmask (!%p253_p3), 195584  }
   0x9   : > { %s1166_s24 = smov (%p30_p4, %s1164_s24), 0  ;;  %256 = sbr.rel (%p253_p3) target bundleno = 266 (0x10a), region = 36 }
   0xa   : > { %v913_v2 = vpack.c.bf16 (!%p253_p3), %v367_v1, %v366_v0  ;;  %v853_v4 = vld [vmem:[%s1154_s3 + $0x18] sm:$0xff] (!%p253_p3)  ;;  %s325_s8 = sadd.s32 (!%p253_p3), 1, %s988_s18  ;;  %s336_s9 = sadd.s32 (!%p253_p3), 2, %s988_s18  ;;  %v860_v5 = vld [vmem:[%s1154_s3 + $0x30] sm:$0xff] (!%p253_p3)  ;;  %v854_v7 = vld [vmem:[%s1154_s3 + $0x20] sm:$0xff] (!%p253_p3)  ;;  %vm627_vm1 = vcmask (!%p253_p3), 64512  }
   0xb   : > { %v861_v6 = vld [vmem:[%s1154_s3 + $0x38] sm:$0xff] (!%p253_p3)  ;;  %v909_v8 = vpack.c.bf16 (!%p253_p3), %v854_v7, %v853_v4  ;;  %v855_v9 = vld [vmem:[%s1154_s3 + $0x28] sm:$0xff] (!%p253_p3)  ;;  %p328_p7 = scmp.lt.s32.totalorder (!%p253_p3), %s325_s8, 17  ;;  %p339_p8 = scmp.lt.s32.totalorder (!%p253_p3), %s336_s9, 17  ;;  %v862_v13 = vld [vmem:[%s1154_s3 + $0x40] sm:$0xff] (!%p253_p3)  ;;  %vm639_vm2 = vcmask (!%p253_p3), 57344  }
   0xc   : > { %914 = vmatprep.subr.bf16.mxu0 (!%p253_p3), %v913_v2  ;;  %v917_v10 = vpack.c.bf16 (!%p253_p3), %v861_v6, %v860_v5  ;;  %p349_p9 = scmp.lt.s32.totalorder (!%p253_p3), %s988_s18, 15 }
   0xd   : > { %916 = vmatpush3.bf16.msra.mxu0 (!%p253_p3), %v913_v2  ;;  %910 = vmatprep.subr.bf16.mxu1 (!%p253_p3), %v909_v8 }
   0xe   : > { %895 = vmatprep.subr.mxu0 (!%p253_p3), %v368_v3  ;;  %912 = vmatpush3.bf16.msra.mxu1 (!%p253_p3), %v909_v8 }
   0xf   : > { %886 = vmatprep.subr.mxu1 (!%p253_p3), %v855_v9 }
  0x10   : > { %s1168_s19 = smov (!%p316_p5, %s992_s19), 1  ;;  %s1170_s8 = smov (!%p328_p7, %s325_s8), 17 }
  0x11   : > { %s319_s16 = scalar_select %p318_p6, %s988_s18, 17  ;;  %896 = vmatpush3.msra.mxu0 %v368_v3 }
  0x12   : > { %s1096_s17 = smul.u32 36, %s1168_s19  ;;  %918 = vmatprep.subr.bf16.mxu0 %v917_v10  ;;  %887 = vmatpush3.msra.mxu1 %v855_v9  ;;  %s1172_s9 = smov (!%p339_p8, %s336_s9), 17 }
  0x13   : > { %s842_s27 = sshll.u32 %s319_s16, 1  ;;  %s844_s12 = sshll.u32 %s1170_s8, 1 }
  0x14   : > { %s322_s28 = sadd.s32 %s1096_s17, %s842_s27  ;;  %s332_s13 = sadd.s32 %s1096_s17, %s844_s12 }
  0x15   : > { %s843_s29 = sshll.u32 %s322_s28, 3  ;;  %s846_s14 = sshll.u32 %s1172_s9, 1 }
  0x16   : > { %s324_s7 = scalar_lea.vmem %s1151_s0, %s843_s29  ;;  %s845_s15 = sshll.u32 %s332_s13, 3 }
  0x17   : > { %v364_v11 = vld [vmem:[%s324_s7] sm:$0xff]  ;;  %v365_v12 = vld [vmem:[%s324_s7 + $0x8] sm:$0xff]  ;;  %s343_s16 = sadd.s32 %s1096_s17, %s846_s14  ;;  %s334_s27 = scalar_lea.vmem %s1152_s1, %s845_s15 }
  0x18   : > { %897 = vmatprep.mubr.msk.f32.mxu0 %vm375_vm0, %v364_v11  ;;  %s847_s28 = sshll.u32 %s343_s16, 3  ;;  %v369_v14 = vld [vmem:[%s334_s27] sm:$0xff]  ;;  %v370_v15 = vld [vmem:[%s334_s27 + $0x8] sm:$0xff]  ;;  %s1174_s18 = smov (!%p349_p9, %s988_s18), 15 }
  0x19   : > { %898 = vmatmul.mubr.msk.f32.vlgmr.msra.gmra.mrb[0].mxu0 %vm375_vm0, %v365_v12  ;;  %s345_s8 = scalar_lea.vmem %s1153_s2, %s847_s28  ;;  %888 = vmatprep.mubr.msk.f32.mxu1 %vm375_vm0, %v369_v14  ;;  %s848_s9 = sshll.u32 %s1174_s18, 1 }
  0x1a   : > { %920 = vmatpush3.bf16.msra.mxu0 %v917_v10  ;;  %v538_v16 = vld [vmem:[%s345_s8] sm:$0xff]  ;;  %v539_v17 = vld [vmem:[%s345_s8 + $0x8] sm:$0xff]  ;;  %889 = vmatmul.mubr.msk.f32.vlgmr.msra.gmra.mrb[0].mxu1 %vm375_vm0, %v370_v15  ;;  %s849_s17 = sshll.u32 %s1168_s19, 5  ;;  %s851_s13 = sshll.u32 %s1168_s19, 4 }
  0x1b   : > { %904 = vmatprep.subr.mxu0 %v862_v13  ;;  %906 = vmatprep.mubr.msk.f32.mxu0 %vm375_vm0, %v538_v16  ;;  %s353_s6 = sadd.s32 %s849_s17, %s848_s9  ;;  %s361_s14 = sadd.s32 %s851_s13, %s1174_s18 }
  0x1c   : > { %s850_s7 = sshll.u32 %s353_s6, 3  ;;  %s852_s15 = sshll.u32 %s361_s14, 1 }
  0x1d   : > { %s355_s12 = scalar_lea.vmem %s1155_s4, %s850_s7  ;;  %s363_s26 = scalar_lea.vmem %s1156_s5, %s852_s15 }
  0x1e   : > { %905 = vmatpush3.msra.mxu0 %v862_v13 }
  0x21   : > { %907 = vmatmul.mubr.msk.f32.vlgmr.msra.gmra.mrb[0].mxu0 %vm375_vm0, %v539_v17 }
  0xed   : > { %v890_v18 = vpop.f32.mrb[0].mxu1 }
  0xee   : > { %v448_v19 = vpop.f32.mrb[1].mxu1 }
  0xf4   : > { %v908_v20 = vpop.f32.mrb[0].mxu0 }
  0xf5   : > { %v921_v21 = vadd.f32 %v908_v20, %v890_v18  ;;  %v616_v22 = vpop.f32.mrb[1].mxu0 }
  0xf6   : > { %v922_v23 = vadd.f32 %v616_v22, %v448_v19 }
  0xf7   : > { %629 = vst.msk [vmem:[%s355_s12 + $0x8] sm:$0xff] %vm627_vm1, %v921_v21  ;;  %v631_v24 = vsel %vm627_vm1, %v921_v21, 0.0  ;;  %v642_v25 = vmul.f32 %v921_v21, %v921_v21 }
  0xf8   : > { %628 = vst.msk [vmem:[%s355_s12] sm:$0xff] %vm627_vm1, %v922_v23  ;;  %v630_v26 = vsel %vm627_vm1, %v922_v23, 0.0  ;;  %v641_v27 = vmul.f32 %v922_v23, %v922_v23 }
  0xf9   : > { %v644_v28 = vsel %vm627_vm1, %v642_v25, 0.0  ;;  %v632_v29 = vadd.f32 %v631_v24, %v630_v26 }
  0xfa   : > { %v643_v30 = vsel %vm627_vm1, %v641_v27, 0.0 }
  0xfb   : > { %v633_v31 = vrot.slane %v632_v29, 4  ;;  %v645_v32 = vadd.f32 %v644_v28, %v643_v30 }
  0xfd   : > { %v634_v33 = vadd.f32 %v633_v31, %v632_v29  ;;  %v646_v34 = vrot.slane %v645_v32, 4 }
  0xff   : > { %v635_v35 = vrot.slane %v634_v33, 2  ;;  %v647_v36 = vadd.f32 %v646_v34, %v645_v32 }
 0x101   : > { %v636_v37 = vadd.f32 %v635_v35, %v634_v33  ;;  %v648_v38 = vrot.slane %v647_v36, 2 }
 0x103   : > { %v637_v39 = vrot.slane %v636_v37, 1  ;;  %v649_v40 = vadd.f32 %v648_v38, %v647_v36 }
 0x105   : > { %v638_v41 = vadd.f32 %v637_v39, %v636_v37  ;;  %v650_v42 = vrot.slane %v649_v40, 1 }
 0x107   : > { %640 = vst.msk [vmem:[%s363_s26] sm:$0x1] %vm639_vm2, %v638_v41  ;;  %v651_v43 = vadd.f32 %v650_v42, %v649_v40 }
 0x109   : > { %652 = vst.msk [vmem:[%s363_s26 + $0x1] sm:$0x1] %vm639_vm2, %v651_v43 }
 0x10a PF: > { %s16_s22 = sadd.s32 1, %s1004_s22   ;;  %s1157_s18 = smov %s996_s20 }
 0x10b   : > { %p13_p10 = scmp.ge.s32.totalorder %s16_s22, 34   ;;  %s1158_s19 = smov %s1000_s21 }
 0x10c   : > { %s1159_s20 = smov %s1162_s23  ;;  %s1160_s21 = smov %s1166_s24 }
 0x10d   :  { %15 = sbr.rel (!%p13_p10) target bundleno = 3 (0x3), region = 86 }

// kernel: decoder_block_forward.7
= control target key start
LH: loop header
LB: loop body
LE: loop exit
PB: predicated region body
PF: predicated region fallthrough
CT: control target
= control target key end

     0   :  { %s104_s0 = inlined_call_operand.vmem [shape: f32[32,128], index: 0, kind: input, shape index: {}]   ;;  %s105_s1 = inlined_call_operand.vmem [shape: f32[1,128], index: 1, kind: input, shape index: {}]   ;;  %s106_s2 = inlined_call_operand.vmem [shape: f32[1,128], index: 2, kind: input, shape index: {}]   ;;  %s107_s3 = inlined_call_operand.vmem [shape: f32[32,128], index: 3, kind: output, shape index: {}]  }
   0x1   :  { %v14_v0 = vld [vmem:[%s104_s0] sm:$0xff]  ;;  %v15_v4 = vld [vmem:[%s104_s0 + $0x8] sm:$0xff]  ;;  %v16_v5 = vld [vmem:[%s104_s0 + $0x10] sm:$0xff] }
   0x2   :  { %v52_v1 = vld [vmem:[%s105_s1] ss:$0 sm:$0xff]  ;;  %v17_v6 = vld [vmem:[%s104_s0 + $0x18] sm:$0xff] }
   0x3   :  { %v53_v2 = vld [vmem:[%s106_s2] ss:$0 sm:$0xff]  ;;  %v25_v3 = vmul.f32 %v52_v1, %v14_v0  ;;  %v26_v7 = vmul.f32 %v52_v1, %v15_v4  ;;  %v27_v8 = vmul.f32 %v52_v1, %v16_v5  ;;  %v28_v9 = vmul.f32 %v52_v1, %v17_v6 }
   0x5   :  { %v36_v10 = vadd.f32 %v53_v2, %v25_v3  ;;  %v37_v11 = vadd.f32 %v53_v2, %v26_v7  ;;  %v38_v12 = vadd.f32 %v53_v2, %v27_v8  ;;  %v39_v13 = vadd.f32 %v53_v2, %v28_v9 }
   0x7   :  { %v40_v14 = vmax.f32 %v36_v10, 0.0  ;;  %v41_v15 = vmax.f32 %v37_v11, 0.0  ;;  %v42_v16 = vmax.f32 %v38_v12, 0.0  ;;  %v43_v17 = vmax.f32 %v39_v13, 0.0 }
   0x9   :  { %44 = vst [vmem:[%s107_s3] sm:$0xff] %v40_v14  ;;  %45 = vst [vmem:[%s107_s3 + $0x8] sm:$0xff] %v41_v15 }
   0xa   :  { %46 = vst [vmem:[%s107_s3 + $0x10] sm:$0xff] %v42_v16  ;;  %47 = vst [vmem:[%s107_s3 + $0x18] sm:$0xff] %v43_v17 }

</bundles_post_ra>
